<compile_context>
chip_gen: v7x
topology: tpu7x:2x2x1
jax: 0.10.0
libtpu: 0.0.40
codegen_flags: <defaults>
</compile_context>

<pallas_src>
import functools
import math

import jax
import jax.numpy as jnp
from jax.experimental import pallas as pl
from jax.experimental.pallas import tpu as pltpu


LANE = 128
_BN_EPS = 1e-5


def _round_up(x, m):
    return ((x + m - 1) // m) * m


# ----------------------------------------------------------------------------
# Kernel 1: tiled fused matmul  out = [relu]( X @ W + bias )
# ----------------------------------------------------------------------------
def matmul_bias_act_kernel(x_ref, w_ref, b_ref, o_ref, acc_ref, *, apply_relu):
    @pl.when(pl.program_id(2) == 0)
    def _init():
        acc_ref[...] = jnp.zeros_like(acc_ref)

    # bf16 x bf16 -> f32 accumulate into the resident VMEM accumulator.
    acc_ref[...] += jnp.dot(x_ref[...], w_ref[...],
                            preferred_element_type=jnp.float32)

    @pl.when(pl.program_id(2) == pl.num_programs(2) - 1)
    def _finalize():
        y = acc_ref[...] + b_ref[...]
        if apply_relu:
            y = jnp.maximum(y, 0.0)
        o_ref[...] = y.astype(o_ref.dtype)


def fused_matmul_bias(patches, w_mat, bias, *, apply_relu, out_dtype,
                      n_pad_to=LANE):
    """patches: (M, K), w_mat: (K, N) with BN scale pre-folded, bias: (N,).

    Returns the (Mp, Np) output in `out_dtype` (row/channel padding kept;
    padded output channels are exactly zero because the padded weight columns
    and bias entries are zero).
    """
    M, K = patches.shape
    N = w_mat.shape[1]

    TM = 256                                  # multiple of 16 (bf16 sublanes)
    Mp = _round_up(M, TM)
    Kp = _round_up(K, LANE)
    TK = 256 if Kp % 256 == 0 else 128        # 256-wide K fills v6e/v7x MXU
    Np = _round_up(max(N, n_pad_to), LANE)
    TN = 256 if Np % 256 == 0 else 128

    xp = jnp.zeros((Mp, Kp), jnp.bfloat16).at[:M, :K].set(
        patches.astype(jnp.bfloat16))
    wp = jnp.zeros((Kp, Np), jnp.bfloat16).at[:K, :N].set(
        w_mat.astype(jnp.bfloat16))
    bp = jnp.zeros((1, Np), jnp.float32).at[0, :N].set(
        bias.astype(jnp.float32))

    kernel = functools.partial(matmul_bias_act_kernel, apply_relu=apply_relu)
    out = pl.pallas_call(
        kernel,
        out_shape=jax.ShapeDtypeStruct((Mp, Np), out_dtype),
        grid_spec=pltpu.PrefetchScalarGridSpec(
            num_scalar_prefetch=0,
            grid=(Mp // TM, Np // TN, Kp // TK),
            in_specs=[
                pl.BlockSpec((TM, TK), lambda i, j, k: (i, k)),
                pl.BlockSpec((TK, TN), lambda i, j, k: (k, j)),
                pl.BlockSpec((1, TN), lambda i, j, k: (0, j)),
            ],
            out_specs=pl.BlockSpec((TM, TN), lambda i, j, k: (i, j)),
            scratch_shapes=[pltpu.VMEM((TM, TN), jnp.float32)],
        ),
        compiler_params=pltpu.CompilerParams(
            dimension_semantics=("parallel", "parallel", "arbitrary")),
    )(xp, wp, bp)
    return out


# ----------------------------------------------------------------------------
# Conv3x3 (stride 1, pad 1) + folded BN (+ optional ReLU)
# ----------------------------------------------------------------------------
def im2col(x, kh, kw, stride, pad):
    """x: (B, H, W, C) NHWC -> (B*Ho*Wo, kh*kw*C) patches, kh/kw outer, C inner."""
    if pad > 0:
        x = jnp.pad(x, ((0, 0), (pad, pad), (pad, pad), (0, 0)))
    B, Hp, Wp, C = x.shape
    Ho = (Hp - kh) // stride + 1
    Wo = (Wp - kw) // stride + 1
    views = []
    for i in range(kh):
        for j in range(kw):
            views.append(
                x[:, i:i + stride * Ho:stride, j:j + stride * Wo:stride, :])
    p = jnp.concatenate(views, axis=-1)
    return p.reshape(B * Ho * Wo, kh * kw * C), (B, Ho, Wo)


def conv3x3_bn(x_nhwc, cin, w, bn_scale, bn_bias, *, apply_relu, out_dtype, cp):
    """x_nhwc: (B, H, W, Cpad) with real channels in [:cin].
    w: PyTorch (Cout, Cin, 3, 3).  Returns channel-padded NHWC (B, H, W, cp)."""
    # Slice the real channels before forming patches (keeps K small) and do
    # the im2col glue in bf16 to halve its HBM traffic.
    patches, (B, Ho, Wo) = im2col(
        x_nhwc[..., :cin].astype(jnp.bfloat16), 3, 3, 1, 1)
    cout = w.shape[0]
    w_mat = jnp.transpose(w, (2, 3, 1, 0)).reshape(9 * cin, cout)
    w_mat = w_mat * bn_scale[None, :]        # fold BN scale into the weights
    y = fused_matmul_bias(patches, w_mat, bn_bias, apply_relu=apply_relu,
                          out_dtype=out_dtype, n_pad_to=cp)
    M = B * Ho * Wo
    return y[:M].reshape(B, Ho, Wo, y.shape[1])


# ----------------------------------------------------------------------------
# Kernel 2: fully fused SE tail, one grid step per batch element
#   gate = sigmoid(fc2(relu(fc1(avg_pool(y)))));  out = relu(y * gate + res)
# ----------------------------------------------------------------------------
def se_residual_kernel(y_ref, r_ref, w1_ref, w2_ref, o_ref, *, inv_hw):
    y = y_ref[0]                                       # (HWp, Cp) f32
    mean = jnp.sum(y, axis=0, keepdims=True) * inv_hw  # (1, Cp) global avg pool
    h = jnp.dot(mean, w1_ref[...], preferred_element_type=jnp.float32)
    h = jnp.maximum(h, 0.0)                            # fc1 + ReLU
    z = jnp.dot(h, w2_ref[...], preferred_element_type=jnp.float32)
    gate = 1.0 / (1.0 + jnp.exp(-z))                   # fc2 + sigmoid, (1, Cp)
    o_ref[0] = jnp.maximum(y * gate + r_ref[0], 0.0)   # SE scale + residual + ReLU


def se_residual(y3d, r3d, w1m, w2m, hw):
    """y3d, r3d: (B, HWp, Cp) f32 (rows beyond hw are zero).
    w1m: (C, Cr), w2m: (Cr, C) stored (in, out).  Returns (B, HWp, Cp)."""
    B, HWp, Cp = y3d.shape
    Cin, Cr = w1m.shape
    Crp = _round_up(Cr, LANE)
    w1p = jnp.zeros((Cp, Crp), jnp.float32).at[:Cin, :Cr].set(
        w1m.astype(jnp.float32))
    w2p = jnp.zeros((Crp, Cp), jnp.float32).at[:Cr, :Cin].set(
        w2m.astype(jnp.float32))
    kernel = functools.partial(se_residual_kernel, inv_hw=1.0 / float(hw))
    return pl.pallas_call(
        kernel,
        out_shape=jax.ShapeDtypeStruct((B, HWp, Cp), jnp.float32),
        grid_spec=pltpu.PrefetchScalarGridSpec(
            num_scalar_prefetch=0,
            grid=(B,),
            in_specs=[
                pl.BlockSpec((1, HWp, Cp), lambda b: (b, 0, 0)),
                pl.BlockSpec((1, HWp, Cp), lambda b: (b, 0, 0)),
                pl.BlockSpec((Cp, Crp), lambda b: (0, 0)),
                pl.BlockSpec((Crp, Cp), lambda b: (0, 0)),
            ],
            out_specs=pl.BlockSpec((1, HWp, Cp), lambda b: (b, 0, 0)),
        ),
        compiler_params=pltpu.CompilerParams(
            dimension_semantics=("parallel",)),
    )(y3d, r3d, w1p, w2p)


# ----------------------------------------------------------------------------
# Parameters (mirrors SEBasicBlock.__init__, inference-mode BatchNorm)
# ----------------------------------------------------------------------------
def init_se_basic_block(key, inplanes, planes, reduction=16):
    k1, k2, k3, k4 = jax.random.split(key, 4)

    def conv_w(k, cin, cout):
        std = math.sqrt(2.0 / (cin * 9))
        return std * jax.random.normal(k, (cout, cin, 3, 3), dtype=jnp.float32)

    def bn(c):
        gamma = jnp.ones((c,), jnp.float32)
        beta = jnp.zeros((c,), jnp.float32)
        mean = jnp.zeros((c,), jnp.float32)
        var = jnp.ones((c,), jnp.float32)
        scale = gamma / jnp.sqrt(var + _BN_EPS)
        return scale, beta - mean * scale

    s1, b1 = bn(planes)
    s2, b2 = bn(planes)
    cr = planes // reduction
    fc1 = (1.0 / math.sqrt(planes)) * jax.random.normal(
        k3, (planes, cr), dtype=jnp.float32)          # stored as (in, out)
    fc2 = (1.0 / math.sqrt(cr)) * jax.random.normal(
        k4, (cr, planes), dtype=jnp.float32)
    return {
        'conv1_w': conv_w(k1, inplanes, planes), 'bn1_scale': s1, 'bn1_bias': b1,
        'conv2_w': conv_w(k2, planes, planes), 'bn2_scale': s2, 'bn2_bias': b2,
        'fc1_w': fc1, 'fc2_w': fc2,
    }


# ----------------------------------------------------------------------------
# Forward pass (mirrors SEBasicBlock.forward, downsample=None / stride=1)
# ----------------------------------------------------------------------------
def se_basic_block_forward(params, x_nchw):
    B, C, H, W = x_nchw.shape
    planes = params['conv2_w'].shape[0]
    Cp = _round_up(max(C, planes), LANE)

    # NCHW -> NHWC, channel-pad once to the lane width (kept padded throughout).
    x = jnp.transpose(x_nchw.astype(jnp.float32), (0, 2, 3, 1))
    x = jnp.pad(x, ((0, 0), (0, 0), (0, 0), (0, Cp - C)))

    # conv1 + bn1 + relu   (one fused Pallas matmul; bf16 output feeds conv2)
    y1 = conv3x3_bn(x, C, params['conv1_w'], params['bn1_scale'],
                    params['bn1_bias'], apply_relu=True,
                    out_dtype=jnp.bfloat16, cp=Cp)
    # conv2 + bn2          (no relu before the SE layer; f32 for the SE math)
    y2 = conv3x3_bn(y1, planes, params['conv2_w'], params['bn2_scale'],
                    params['bn2_bias'], apply_relu=False,
                    out_dtype=jnp.float32, cp=Cp)

    # Flatten spatial dims for the fused SE / residual kernel.
    HW = H * W
    HWp = _round_up(HW, 8)

    def to_rows(t):
        t = t.reshape(B, HW, Cp)
        if HWp != HW:
            t = jnp.pad(t, ((0, 0), (0, HWp - HW), (0, 0)))
        return t

    y2r = to_rows(y2)
    rres = to_rows(x)            # residual = input (downsample is None)

    # SE gate + scale + residual + relu, all in one kernel (grid over batch).
    out = se_residual(y2r, rres, params['fc1_w'], params['fc2_w'], HW)

    out = out[:, :HW, :C].reshape(B, H, W, C)
    return jnp.transpose(out, (0, 3, 1, 2))      # NHWC -> NCHW


# ----------------------------------------------------------------------------
# Pure-JAX reference (f32) for a numerical sanity check
# ----------------------------------------------------------------------------
def reference_forward(params, x):
    dn = ('NCHW', 'OIHW', 'NCHW')

    def conv(inp, w):
        return jax.lax.conv_general_dilated(
            inp, w, (1, 1), ((1, 1), (1, 1)), dimension_numbers=dn,
            precision=jax.lax.Precision.HIGHEST)

    y = conv(x, params['conv1_w'])
    y = y * params['bn1_scale'][None, :, None, None] \
        + params['bn1_bias'][None, :, None, None]
    y = jnp.maximum(y, 0.0)
    y = conv(y, params['conv2_w'])
    y = y * params['bn2_scale'][None, :, None, None] \
        + params['bn2_bias'][None, :, None, None]
    m = jnp.mean(y, axis=(2, 3))                          # (B, C)
    h = jnp.maximum(m @ params['fc1_w'], 0.0)
    g = jax.nn.sigmoid(h @ params['fc2_w'])               # (B, C)
    y = y * g[:, :, None, None]
    return jnp.maximum(y + x, 0.0)


# ----------------------------------------------------------------------------
# Main
# ----------------------------------------------------------------------------
if __name__ == "__main__":
    # SELayer uses reduction=16, so planes must be >= 16; inplanes == planes
    # because downsample is None (identity residual).
    inplanes = planes = 32
    B, H, W = 2, 16, 16

    key = jax.random.PRNGKey(0)
    k_params, k_input = jax.random.split(key)

    params = init_se_basic_block(k_params, inplanes, planes, reduction=16)
    x = jax.random.normal(k_input, (B, inplanes, H, W), dtype=jnp.float32)

    fwd = jax.jit(se_basic_block_forward)
    out = jax.block_until_ready(fwd(params, x))

    assert out.shape == (B, planes, H, W), out.shape
    assert bool(jnp.all(jnp.isfinite(out)))
    assert bool(jnp.all(out >= 0.0))     # final ReLU

    # Numerical check against the f32 reference (kernel uses bf16 MXU inputs).
    ref = jax.block_until_ready(reference_forward(params, x))
    assert bool(jnp.allclose(out, ref, rtol=5e-2, atol=5e-2)), float(
        jnp.max(jnp.abs(out - ref)))

    print("KERNEL_OK")
</pallas_src>

<mosaic_0001>
module attributes {stable_mosaic.version = 11 : i64} {
  func.func @matmul_bias_act_kernel(%arg0: i32, %arg1: i32, %arg2: i32, %arg3: memref<256x128xbf16, #tpu.memory_space<vmem>>, %arg4: memref<128x128xbf16, #tpu.memory_space<vmem>>, %arg5: memref<1x128xf32, #tpu.memory_space<vmem>>, %arg6: memref<256x128xf32, #tpu.memory_space<vmem>>, %arg7: memref<256x128xf32, #tpu.memory_space<vmem>>) attributes {dimension_semantics = [#tpu.dimension_semantics<parallel>, #tpu.dimension_semantics<parallel>, #tpu.dimension_semantics<arbitrary>], iteration_bounds = array<i64: 2, 1, 3>, scalar_prefetch = 0 : i64, scratch_operands = 1 : i64, tpu.core_type = #tpu.core_type<tc>, window_params = [{transform_indices = @transform_0, window_bounds = array<i64: 256, 128>}, {transform_indices = @transform_1, window_bounds = array<i64: 128, 128>}, {transform_indices = @transform_2, window_bounds = array<i64: 1, 128>}, {transform_indices = @transform_3, window_bounds = array<i64: 256, 128>}]} {
    %c0_i32 = arith.constant 0 : i32
    %0 = arith.cmpi eq, %arg2, %c0_i32 : i32
    %1 = arith.extui %0 : i1 to i32
    %c0_i32_0 = arith.constant 0 : i32
    %2 = arith.cmpi ne, %1, %c0_i32_0 : i32
    scf.if %2 {
      %cst_9 = arith.constant 0.000000e+00 : f32
      %12 = vector.broadcast %cst_9 : f32 to vector<256x128xf32>
      %c0_10 = arith.constant 0 : index
      %c0_11 = arith.constant 0 : index
      %13 = vector.load %arg7[%c0_10, %c0_11] : memref<256x128xf32, #tpu.memory_space<vmem>>, vector<256x128xf32>
      tpu.vector_store %arg7[%c0_10, %c0_11], %12 {strides = array<i32>} : memref<256x128xf32, #tpu.memory_space<vmem>>, vector<256x128xf32>,
    } else {
    }
    %c0 = arith.constant 0 : index
    %c0_1 = arith.constant 0 : index
    %3 = vector.load %arg7[%c0, %c0_1] : memref<256x128xf32, #tpu.memory_space<vmem>>, vector<256x128xf32>
    %c0_2 = arith.constant 0 : index
    %c0_3 = arith.constant 0 : index
    %4 = vector.load %arg3[%c0_2, %c0_3] : memref<256x128xbf16, #tpu.memory_space<vmem>>, vector<256x128xbf16>
    %c0_4 = arith.constant 0 : index
    %c0_5 = arith.constant 0 : index
    %5 = vector.load %arg4[%c0_4, %c0_5] : memref<128x128xbf16, #tpu.memory_space<vmem>>, vector<128x128xbf16>
    %cst = arith.constant dense<0.000000e+00> : vector<256x128xf32>
    %6 = tpu.matmul %4, %5, %cst {dimension_numbers = #tpu.dot_dimension_numbers<[1], [0], [0], [1], [0, 0, 1, 1], [], []>} : vector<256x128xbf16>, vector<128x128xbf16>, vector<256x128xf32> -> vector<256x128xf32>
    %7 = arith.addf %3, %6 : vector<256x128xf32>
    %c0_6 = arith.constant 0 : index
    %c0_7 = arith.constant 0 : index
    %8 = vector.load %arg7[%c0_6, %c0_7] : memref<256x128xf32, #tpu.memory_space<vmem>>, vector<256x128xf32>
    tpu.vector_store %arg7[%c0_6, %c0_7], %7 {strides = array<i32>} : memref<256x128xf32, #tpu.memory_space<vmem>>, vector<256x128xf32>,
    %c2_i32 = arith.constant 2 : i32
    %9 = arith.cmpi eq, %arg2, %c2_i32 : i32
    %10 = arith.extui %9 : i1 to i32
    %c0_i32_8 = arith.constant 0 : i32
    %11 = arith.cmpi ne, %10, %c0_i32_8 : i32
    scf.if %11 {
      %c0_9 = arith.constant 0 : index
      %c0_10 = arith.constant 0 : index
      %12 = vector.load %arg7[%c0_9, %c0_10] : memref<256x128xf32, #tpu.memory_space<vmem>>, vector<256x128xf32>
      %c0_11 = arith.constant 0 : index
      %c0_12 = arith.constant 0 : index
      %13 = vector.load %arg5[%c0_11, %c0_12] : memref<1x128xf32, #tpu.memory_space<vmem>>, vector<1x128xf32>
      %14 = vector.broadcast %13 : vector<1x128xf32> to vector<256x128xf32>
      %15 = arith.addf %12, %14 : vector<256x128xf32>
      %c0_13 = arith.constant 0 : index
      %c0_14 = arith.constant 0 : index
      %16 = vector.load %arg6[%c0_13, %c0_14] : memref<256x128xf32, #tpu.memory_space<vmem>>, vector<256x128xf32>
      tpu.vector_store %arg6[%c0_13, %c0_14], %15 {strides = array<i32>} : memref<256x128xf32, #tpu.memory_space<vmem>>, vector<256x128xf32>,
    } else {
    }
    return
  }
  func.func @transform_0(%arg0: i32, %arg1: i32, %arg2: i32) -> (i32, i32) {
    %c0_i32 = arith.constant 0 : i32
    return %arg0, %arg2 : i32, i32
  }
  func.func @transform_1(%arg0: i32, %arg1: i32, %arg2: i32) -> (i32, i32) {
    %c0_i32 = arith.constant 0 : i32
    return %arg2, %arg1 : i32, i32
  }
  func.func @transform_2(%arg0: i32, %arg1: i32, %arg2: i32) -> (i32, i32) {
    %c0_i32 = arith.constant 0 : i32
    %c0_i32_0 = arith.constant 0 : i32
    return %c0_i32, %arg1 : i32, i32
  }
  func.func @transform_3(%arg0: i32, %arg1: i32, %arg2: i32) -> (i32, i32) {
    %c0_i32 = arith.constant 0 : i32
    return %arg0, %arg1 : i32, i32
  }
}

module attributes {stable_mosaic.version = 11 : i64} {
  func.func @matmul_bias_act_kernel(%arg0: i32, %arg1: i32, %arg2: i32, %arg3: memref<256x128xbf16, #tpu.memory_space<vmem>>, %arg4: memref<128x128xbf16, #tpu.memory_space<vmem>>, %arg5: memref<1x128xf32, #tpu.memory_space<vmem>>, %arg6: memref<256x128xbf16, #tpu.memory_space<vmem>>, %arg7: memref<256x128xf32, #tpu.memory_space<vmem>>) attributes {dimension_semantics = [#tpu.dimension_semantics<parallel>, #tpu.dimension_semantics<parallel>, #tpu.dimension_semantics<arbitrary>], iteration_bounds = array<i64: 2, 1, 3>, scalar_prefetch = 0 : i64, scratch_operands = 1 : i64, tpu.core_type = #tpu.core_type<tc>, window_params = [{transform_indices = @transform_0, window_bounds = array<i64: 256, 128>}, {transform_indices = @transform_1, window_bounds = array<i64: 128, 128>}, {transform_indices = @transform_2, window_bounds = array<i64: 1, 128>}, {transform_indices = @transform_3, window_bounds = array<i64: 256, 128>}]} {
    %c0_i32 = arith.constant 0 : i32
    %0 = arith.cmpi eq, %arg2, %c0_i32 : i32
    %1 = arith.extui %0 : i1 to i32
    %c0_i32_0 = arith.constant 0 : i32
    %2 = arith.cmpi ne, %1, %c0_i32_0 : i32
    scf.if %2 {
      %cst_9 = arith.constant 0.000000e+00 : f32
      %12 = vector.broadcast %cst_9 : f32 to vector<256x128xf32>
      %c0_10 = arith.constant 0 : index
      %c0_11 = arith.constant 0 : index
      %13 = vector.load %arg7[%c0_10, %c0_11] : memref<256x128xf32, #tpu.memory_space<vmem>>, vector<256x128xf32>
      tpu.vector_store %arg7[%c0_10, %c0_11], %12 {strides = array<i32>} : memref<256x128xf32, #tpu.memory_space<vmem>>, vector<256x128xf32>,
    } else {
    }
    %c0 = arith.constant 0 : index
    %c0_1 = arith.constant 0 : index
    %3 = vector.load %arg7[%c0, %c0_1] : memref<256x128xf32, #tpu.memory_space<vmem>>, vector<256x128xf32>
    %c0_2 = arith.constant 0 : index
    %c0_3 = arith.constant 0 : index
    %4 = vector.load %arg3[%c0_2, %c0_3] : memref<256x128xbf16, #tpu.memory_space<vmem>>, vector<256x128xbf16>
    %c0_4 = arith.constant 0 : index
    %c0_5 = arith.constant 0 : index
    %5 = vector.load %arg4[%c0_4, %c0_5] : memref<128x128xbf16, #tpu.memory_space<vmem>>, vector<128x128xbf16>
    %cst = arith.constant dense<0.000000e+00> : vector<256x128xf32>
    %6 = tpu.matmul %4, %5, %cst {dimension_numbers = #tpu.dot_dimension_numbers<[1], [0], [0], [1], [0, 0, 1, 1], [], []>} : vector<256x128xbf16>, vector<128x128xbf16>, vector<256x128xf32> -> vector<256x128xf32>
    %7 = arith.addf %3, %6 : vector<256x128xf32>
    %c0_6 = arith.constant 0 : index
    %c0_7 = arith.constant 0 : index
    %8 = vector.load %arg7[%c0_6, %c0_7] : memref<256x128xf32, #tpu.memory_space<vmem>>, vector<256x128xf32>
    tpu.vector_store %arg7[%c0_6, %c0_7], %7 {strides = array<i32>} : memref<256x128xf32, #tpu.memory_space<vmem>>, vector<256x128xf32>,
    %c2_i32 = arith.constant 2 : i32
    %9 = arith.cmpi eq, %arg2, %c2_i32 : i32
    %10 = arith.extui %9 : i1 to i32
    %c0_i32_8 = arith.constant 0 : i32
    %11 = arith.cmpi ne, %10, %c0_i32_8 : i32
    scf.if %11 {
      %c0_9 = arith.constant 0 : index
      %c0_10 = arith.constant 0 : index
      %12 = vector.load %arg7[%c0_9, %c0_10] : memref<256x128xf32, #tpu.memory_space<vmem>>, vector<256x128xf32>
      %c0_11 = arith.constant 0 : index
      %c0_12 = arith.constant 0 : index
      %13 = vector.load %arg5[%c0_11, %c0_12] : memref<1x128xf32, #tpu.memory_space<vmem>>, vector<1x128xf32>
      %14 = vector.broadcast %13 : vector<1x128xf32> to vector<256x128xf32>
      %15 = arith.addf %12, %14 : vector<256x128xf32>
      %cst_13 = arith.constant 0.000000e+00 : f32
      %16 = vector.broadcast %cst_13 : f32 to vector<256x128xf32>
      %17 = arith.maximumf %15, %16 : vector<256x128xf32>
      %18 = arith.truncf %17 : vector<256x128xf32> to vector<256x128xbf16>
      %c0_14 = arith.constant 0 : index
      %c0_15 = arith.constant 0 : index
      %19 = vector.load %arg6[%c0_14, %c0_15] : memref<256x128xbf16, #tpu.memory_space<vmem>>, vector<256x128xbf16>
      tpu.vector_store %arg6[%c0_14, %c0_15], %18 {strides = array<i32>} : memref<256x128xbf16, #tpu.memory_space<vmem>>, vector<256x128xbf16>,
    } else {
    }
    return
  }
  func.func @transform_0(%arg0: i32, %arg1: i32, %arg2: i32) -> (i32, i32) {
    %c0_i32 = arith.constant 0 : i32
    return %arg0, %arg2 : i32, i32
  }
  func.func @transform_1(%arg0: i32, %arg1: i32, %arg2: i32) -> (i32, i32) {
    %c0_i32 = arith.constant 0 : i32
    return %arg2, %arg1 : i32, i32
  }
  func.func @transform_2(%arg0: i32, %arg1: i32, %arg2: i32) -> (i32, i32) {
    %c0_i32 = arith.constant 0 : i32
    %c0_i32_0 = arith.constant 0 : i32
    return %c0_i32, %arg1 : i32, i32
  }
  func.func @transform_3(%arg0: i32, %arg1: i32, %arg2: i32) -> (i32, i32) {
    %c0_i32 = arith.constant 0 : i32
    return %arg0, %arg1 : i32, i32
  }
}

module attributes {stable_mosaic.version = 11 : i64} {
  func.func @se_residual_kernel(%arg0: i32, %arg1: memref<1x256x128xf32, #tpu.memory_space<vmem>>, %arg2: memref<1x256x128xf32, #tpu.memory_space<vmem>>, %arg3: memref<128x128xf32, #tpu.memory_space<vmem>>, %arg4: memref<128x128xf32, #tpu.memory_space<vmem>>, %arg5: memref<1x256x128xf32, #tpu.memory_space<vmem>>) attributes {dimension_semantics = [#tpu.dimension_semantics<parallel>], iteration_bounds = array<i64: 2>, scalar_prefetch = 0 : i64, scratch_operands = 0 : i64, tpu.core_type = #tpu.core_type<tc>, window_params = [{transform_indices = @transform_0, window_bounds = array<i64: 1, 256, 128>}, {transform_indices = @transform_1, window_bounds = array<i64: 1, 256, 128>}, {pipeline_mode = #tpu.pipeline_mode<synchronous>, transform_indices = @transform_2, window_bounds = array<i64: 128, 128>}, {pipeline_mode = #tpu.pipeline_mode<synchronous>, transform_indices = @transform_3, window_bounds = array<i64: 128, 128>}, {transform_indices = @transform_4, window_bounds = array<i64: 1, 256, 128>}]} {
    %c0 = arith.constant 0 : index
    %c0_0 = arith.constant 0 : index
    %c0_1 = arith.constant 0 : index
    %0 = vector.load %arg1[%c0, %c0_0, %c0_1] : memref<1x256x128xf32, #tpu.memory_space<vmem>>, vector<1x256x128xf32>
    %1 = vector.shape_cast %0 : vector<1x256x128xf32> to vector<256x128xf32>
    %cst = arith.constant dense<0.000000e+00> : vector<128xf32>
    %2 = vector.multi_reduction <add>, %1, %cst [0] : vector<256x128xf32> to vector<128xf32>
    %3 = vector.shape_cast %2 : vector<128xf32> to vector<1x128xf32>
    %cst_2 = arith.constant 3.906250e-03 : f32
    %4 = vector.broadcast %cst_2 : f32 to vector<1x128xf32>
    %5 = arith.mulf %3, %4 : vector<1x128xf32>
    %c0_3 = arith.constant 0 : index
    %c0_4 = arith.constant 0 : index
    %6 = vector.load %arg3[%c0_3, %c0_4] : memref<128x128xf32, #tpu.memory_space<vmem>>, vector<128x128xf32>
    %cst_5 = arith.constant dense<0.000000e+00> : vector<1x128xf32>
    %7 = tpu.matmul %5, %6, %cst_5 {dimension_numbers = #tpu.dot_dimension_numbers<[1], [0], [0], [1], [0, 0, 1, 1], [], []>} : vector<1x128xf32>, vector<128x128xf32>, vector<1x128xf32> -> vector<1x128xf32>
    %cst_6 = arith.constant 0.000000e+00 : f32
    %8 = vector.broadcast %cst_6 : f32 to vector<1x128xf32>
    %9 = arith.maximumf %7, %8 : vector<1x128xf32>
    %c0_7 = arith.constant 0 : index
    %c0_8 = arith.constant 0 : index
    %10 = vector.load %arg4[%c0_7, %c0_8] : memref<128x128xf32, #tpu.memory_space<vmem>>, vector<128x128xf32>
    %cst_9 = arith.constant dense<0.000000e+00> : vector<1x128xf32>
    %11 = tpu.matmul %9, %10, %cst_9 {dimension_numbers = #tpu.dot_dimension_numbers<[1], [0], [0], [1], [0, 0, 1, 1], [], []>} : vector<1x128xf32>, vector<128x128xf32>, vector<1x128xf32> -> vector<1x128xf32>
    %cst_10 = arith.constant 0.000000e+00 : f32
    %12 = vector.broadcast %cst_10 : f32 to vector<1x128xf32>
    %13 = arith.subf %12, %11 : vector<1x128xf32>
    %14 = math.exp %13 : vector<1x128xf32>
    %cst_11 = arith.constant 1.000000e+00 : f32
    %15 = vector.broadcast %cst_11 : f32 to vector<1x128xf32>
    %16 = arith.addf %15, %14 : vector<1x128xf32>
    %cst_12 = arith.constant 1.000000e+00 : f32
    %17 = vector.broadcast %cst_12 : f32 to vector<1x128xf32>
    %18 = arith.divf %17, %16 : vector<1x128xf32>
    %19 = vector.broadcast %18 : vector<1x128xf32> to vector<256x128xf32>
    %20 = arith.mulf %1, %19 : vector<256x128xf32>
    %c0_13 = arith.constant 0 : index
    %c0_14 = arith.constant 0 : index
    %c0_15 = arith.constant 0 : index
    %21 = vector.load %arg2[%c0_13, %c0_14, %c0_15] : memref<1x256x128xf32, #tpu.memory_space<vmem>>, vector<1x256x128xf32>
    %22 = vector.shape_cast %21 : vector<1x256x128xf32> to vector<256x128xf32>
    %23 = arith.addf %20, %22 : vector<256x128xf32>
    %cst_16 = arith.constant 0.000000e+00 : f32
    %24 = vector.broadcast %cst_16 : f32 to vector<256x128xf32>
    %25 = arith.maximumf %23, %24 : vector<256x128xf32>
    %c0_17 = arith.constant 0 : index
    %c0_18 = arith.constant 0 : index
    %c0_19 = arith.constant 0 : index
    %26 = vector.load %arg5[%c0_17, %c0_18, %c0_19] : memref<1x256x128xf32, #tpu.memory_space<vmem>>, vector<1x256x128xf32>
    %27 = vector.shape_cast %26 : vector<1x256x128xf32> to vector<256x128xf32>
    %28 = vector.shape_cast %25 : vector<256x128xf32> to vector<1x256x128xf32>
    tpu.vector_store %arg5[%c0_17, %c0_18, %c0_19], %28 {strides = array<i32>} : memref<1x256x128xf32, #tpu.memory_space<vmem>>, vector<1x256x128xf32>,
    return
  }
  func.func @transform_0(%arg0: i32) -> (i32, i32, i32) {
    %c0_i32 = arith.constant 0 : i32
    %c0_i32_0 = arith.constant 0 : i32
    %c0_i32_1 = arith.constant 0 : i32
    return %arg0, %c0_i32, %c0_i32_0 : i32, i32, i32
  }
  func.func @transform_1(%arg0: i32) -> (i32, i32, i32) {
    %c0_i32 = arith.constant 0 : i32
    %c0_i32_0 = arith.constant 0 : i32
    %c0_i32_1 = arith.constant 0 : i32
    return %arg0, %c0_i32, %c0_i32_0 : i32, i32, i32
  }
  func.func @transform_2(%arg0: i32) -> (i32, i32) {
    %c0_i32 = arith.constant 0 : i32
    %c0_i32_0 = arith.constant 0 : i32
    %c0_i32_1 = arith.constant 0 : i32
    return %c0_i32, %c0_i32_0 : i32, i32
  }
  func.func @transform_3(%arg0: i32) -> (i32, i32) {
    %c0_i32 = arith.constant 0 : i32
    %c0_i32_0 = arith.constant 0 : i32
    %c0_i32_1 = arith.constant 0 : i32
    return %c0_i32, %c0_i32_0 : i32, i32
  }
  func.func @transform_4(%arg0: i32) -> (i32, i32, i32) {
    %c0_i32 = arith.constant 0 : i32
    %c0_i32_0 = arith.constant 0 : i32
    %c0_i32_1 = arith.constant 0 : i32
    return %arg0, %c0_i32, %c0_i32_0 : i32, i32, i32
  }
}

</mosaic_0001>

<bundles_post_ra>
// kernel: se_basic_block_forward.3
= control target key start
LH: loop header
LB: loop body
LE: loop exit
PB: predicated region body
PF: predicated region fallthrough
CT: control target
= control target key end

     0   :  { %s1736_s12 = smov 0   ;;  %s1738_s13 = smov 0   ;;  %s1981_s0 = inlined_call_operand.vmem [shape: bf16[512,384], index: 0, kind: input, shape index: {}]   ;;  %s1982_s1 = inlined_call_operand.vmem [shape: bf16[384,128], index: 1, kind: input, shape index: {}]   ;;  %s1983_s2 = inlined_call_operand.vmem [shape: f32[1,128], index: 2, kind: input, shape index: {}]   ;;  %s1984_s3 = inlined_call_operand.vmem [shape: bf16[512,128], index: 3, kind: output, shape index: {}]  }
   0x1   :  { %s1740_s14 = smov 0   ;;  %s1742_s15 = smov 0  }
   0x2   :  { %s1744_s16 = smov 0   ;;  %s1746_s17 = smov 0  }
   0x3   :  { %s1748_s18 = smov 0  }
   0x4 LB: > { %s25_s19 = sadd.s32 1, %s1705_s16  ;;  %s32_s20 = sadd.s32 1, %s1709_s17  ;;  %s1713_s18 = sphi %s1748_s18, %s13_s18   ;;  %s1709_s17 = sphi %s1746_s17, %s1990_s17   ;;  %s1705_s16 = sphi %s1744_s16, %s1989_s16   ;;  %s1701_s15 = sphi %s1742_s15, %s1988_s15   ;;  %s1697_s14 = sphi %s1740_s14, %s1987_s14   ;;  %s1693_s13 = sphi %s1738_s13, %s1986_s13   ;;  %s1689_s12 = sphi %s1736_s12, %s1985_s12  }
   0x5   : > { %p26_p0 = scmp.ge.s32.totalorder %s25_s19, 3  ;;  %p48_p1 = scmp.ne.s32.totalorder %s1693_s13, %s1689_s12 }
   0x6   : > { %p49_p2 = scmp.eq.s32.totalorder %s1713_s18, 0  ;;  %s41_s24 = sadd.s32 1, %s1693_s13 }
   0x7   : > { %s1992_s19 = smov (%p26_p0, %s25_s19), 0  ;;  %s1994_s20 = smov (!%p26_p0, %s32_s20), %s1709_s17 }
   0x8   : > { %p50_p3 = por %p49_p2, %p48_p1  ;;  %p34_p4 = scmp.ge.s32.totalorder %s1994_s20, 2 }
   0x9   : > { %s37_s21 = ssub.s32 %s1705_s16, %s1992_s19  ;;  %p1290_p6 = scmp.ge.s32.totalorder %s1713_s18, 6 }
   0xa   : > { %s1996_s20 = smov (%p34_p4, %s1994_s20), 0 }
   0xb   : > { %s36_s22 = ssub.s32 %s1709_s17, %s1996_s20  ;;  %162 = sbr.rel (%p1290_p6) target bundleno = 46 (0x2e), region = 20 }
   0xc   : > { %s38_s23 = sor.u32 %s37_s21, %s36_s22 }
   0xd   : > { %p39_p5 = scmp.eq.s32.totalorder %s38_s23, 0 }
   0xf   : > { %s1787_s25 = scalar_select %p39_p5, %s1693_s13, %s41_s24  }
  0x12   : > { %165 = sbr.rel (!%p50_p3) target bundleno = 46 (0x2e), region = 24  ;;  %s167_s26 = sand.u32 (%p50_p3), 1, %s1693_s13  }
  0x13   : > { %s1577_s27 = smul.u32 (%p50_p3), 96, %s1709_s17  ;;  %s1291_s28 = sshll.u32 (%p50_p3), %s167_s26, 7 }
  0x14   : > { %s1801_s7 = scalar_lea.vmem (%p50_p3), [#allocation3], %s1291_s28 }
  0x15   : > { %s172_s29 = sadd.s32 (%p50_p3), %s1705_s16, %s1577_s27 }
  0x16   : > { %s1294_s30 = sshll.u32 (%p50_p3), %s172_s29, 2 }
  0x17   : > { %s1796_s6 = scalar_lea.vmem (%p50_p3), %s1981_s0, %s1294_s30 }
  0x18   : > { %v190_v0 = vld [vmem:[%s1796_s6] sm:$0xf] (%p50_p3)  ;;  %v192_v1 = vld [vmem:[%s1796_s6 + $0xc] sm:$0xf] (%p50_p3)  ;;  %v194_v2 = vld [vmem:[%s1796_s6 + $0x18] sm:$0xf] (%p50_p3) }
  0x19   : > { %191 = vst [vmem:[%s1801_s7] sm:$0xf] %v190_v0  ;;  %193 = vst [vmem:[%s1801_s7 + $0x4] sm:$0xf] %v192_v1  ;;  %v196_v3 = vld [vmem:[%s1796_s6 + $0x24] sm:$0xf] }
  0x1a   : > { %195 = vst [vmem:[%s1801_s7 + $0x8] sm:$0xf] %v194_v2  ;;  %v198_v4 = vld [vmem:[%s1796_s6 + $0x30] sm:$0xf]  ;;  %v200_v5 = vld [vmem:[%s1796_s6 + $0x3c] sm:$0xf] }
  0x1b   : > { %197 = vst [vmem:[%s1801_s7 + $0xc] sm:$0xf] %v196_v3  ;;  %199 = vst [vmem:[%s1801_s7 + $0x10] sm:$0xf] %v198_v4  ;;  %v202_v6 = vld [vmem:[%s1796_s6 + $0x48] sm:$0xf] }
  0x1c   : > { %201 = vst [vmem:[%s1801_s7 + $0x14] sm:$0xf] %v200_v5  ;;  %v204_v7 = vld [vmem:[%s1796_s6 + $0x54] sm:$0xf]  ;;  %v206_v8 = vld [vmem:[%s1796_s6 + $0x60] sm:$0xf] }
  0x1d   : > { %203 = vst [vmem:[%s1801_s7 + $0x18] sm:$0xf] %v202_v6  ;;  %205 = vst [vmem:[%s1801_s7 + $0x1c] sm:$0xf] %v204_v7  ;;  %v208_v9 = vld [vmem:[%s1796_s6 + $0x6c] sm:$0xf] }
  0x1e   : > { %207 = vst [vmem:[%s1801_s7 + $0x20] sm:$0xf] %v206_v8  ;;  %v210_v10 = vld [vmem:[%s1796_s6 + $0x78] sm:$0xf]  ;;  %v212_v11 = vld [vmem:[%s1796_s6 + $0x84] sm:$0xf] }
  0x1f   : > { %209 = vst [vmem:[%s1801_s7 + $0x24] sm:$0xf] %v208_v9  ;;  %211 = vst [vmem:[%s1801_s7 + $0x28] sm:$0xf] %v210_v10  ;;  %v214_v12 = vld [vmem:[%s1796_s6 + $0x90] sm:$0xf] }
  0x20   : > { %213 = vst [vmem:[%s1801_s7 + $0x2c] sm:$0xf] %v212_v11  ;;  %v216_v13 = vld [vmem:[%s1796_s6 + $0x9c] sm:$0xf]  ;;  %v218_v14 = vld [vmem:[%s1796_s6 + $0xa8] sm:$0xf] }
  0x21   : > { %215 = vst [vmem:[%s1801_s7 + $0x30] sm:$0xf] %v214_v12  ;;  %217 = vst [vmem:[%s1801_s7 + $0x34] sm:$0xf] %v216_v13  ;;  %v220_v15 = vld [vmem:[%s1796_s6 + $0xb4] sm:$0xf] }
  0x22   : > { %219 = vst [vmem:[%s1801_s7 + $0x38] sm:$0xf] %v218_v14  ;;  %v222_v16 = vld [vmem:[%s1796_s6 + $0xc0] sm:$0xf]  ;;  %v224_v17 = vld [vmem:[%s1796_s6 + $0xcc] sm:$0xf] }
  0x23   : > { %221 = vst [vmem:[%s1801_s7 + $0x3c] sm:$0xf] %v220_v15  ;;  %223 = vst [vmem:[%s1801_s7 + $0x40] sm:$0xf] %v222_v16  ;;  %v226_v18 = vld [vmem:[%s1796_s6 + $0xd8] sm:$0xf] }
  0x24   : > { %225 = vst [vmem:[%s1801_s7 + $0x44] sm:$0xf] %v224_v17  ;;  %v228_v19 = vld [vmem:[%s1796_s6 + $0xe4] sm:$0xf]  ;;  %v230_v20 = vld [vmem:[%s1796_s6 + $0xf0] sm:$0xf] }
  0x25   : > { %227 = vst [vmem:[%s1801_s7 + $0x48] sm:$0xf] %v226_v18  ;;  %229 = vst [vmem:[%s1801_s7 + $0x4c] sm:$0xf] %v228_v19  ;;  %v232_v21 = vld [vmem:[%s1796_s6 + $0xfc] sm:$0xf] }
  0x26   : > { %231 = vst [vmem:[%s1801_s7 + $0x50] sm:$0xf] %v230_v20  ;;  %v234_v22 = vld [vmem:[%s1796_s6 + $0x108] sm:$0xf]  ;;  %v236_v23 = vld [vmem:[%s1796_s6 + $0x114] sm:$0xf] }
  0x27   : > { %233 = vst [vmem:[%s1801_s7 + $0x54] sm:$0xf] %v232_v21  ;;  %235 = vst [vmem:[%s1801_s7 + $0x58] sm:$0xf] %v234_v22  ;;  %v238_v24 = vld [vmem:[%s1796_s6 + $0x120] sm:$0xf] }
  0x28   : > { %237 = vst [vmem:[%s1801_s7 + $0x5c] sm:$0xf] %v236_v23  ;;  %v240_v25 = vld [vmem:[%s1796_s6 + $0x12c] sm:$0xf]  ;;  %v242_v26 = vld [vmem:[%s1796_s6 + $0x138] sm:$0xf] }
  0x29   : > { %239 = vst [vmem:[%s1801_s7 + $0x60] sm:$0xf] %v238_v24  ;;  %241 = vst [vmem:[%s1801_s7 + $0x64] sm:$0xf] %v240_v25  ;;  %v244_v27 = vld [vmem:[%s1796_s6 + $0x144] sm:$0xf] }
  0x2a   : > { %243 = vst [vmem:[%s1801_s7 + $0x68] sm:$0xf] %v242_v26  ;;  %v246_v28 = vld [vmem:[%s1796_s6 + $0x150] sm:$0xf]  ;;  %v248_v29 = vld [vmem:[%s1796_s6 + $0x15c] sm:$0xf] }
  0x2b   : > { %245 = vst [vmem:[%s1801_s7 + $0x6c] sm:$0xf] %v244_v27  ;;  %247 = vst [vmem:[%s1801_s7 + $0x70] sm:$0xf] %v246_v28  ;;  %v250_v30 = vld [vmem:[%s1796_s6 + $0x168] sm:$0xf] }
  0x2c   : > { %249 = vst [vmem:[%s1801_s7 + $0x74] sm:$0xf] %v248_v29  ;;  %v252_v31 = vld [vmem:[%s1796_s6 + $0x174] sm:$0xf]  ;;  %251 = vst [vmem:[%s1801_s7 + $0x78] sm:$0xf] %v250_v30 }
  0x2d   : > { %253 = vst [vmem:[%s1801_s7 + $0x7c] sm:$0xf] %v252_v31 }
  0x2e PF: > { %p1295_p7 = scmp.ge.s32.totalorder %s1713_s18, 1  ;;  %p351_p8 = scmp.lt.s32.totalorder %s1713_s18, 7 }
  0x30   : > { %p352_p9 = pnand %p1295_p7, %p351_p8 }
  0x31   : > { %s358_s8 = sand.u32 (!%p352_p9), 1, %s1689_s12   ;;  %s1297_s9 = sshll.u32 (!%p352_p9), %s1697_s14, 4 }
  0x32   : > { %355 = sbr.rel (%p352_p9) target bundleno = 366 (0x16e), region = 69  ;;  %s1296_s10 = sshll.u32 (!%p352_p9), %s358_s8, 7 }
  0x33   : > { %p397_p10 = scmp.lt.s32.totalorder (!%p352_p9), %s1297_s9, 47  ;;  %s1299_s11 = sshll.u32 (!%p352_p9), %s1701_s15, 5 }
  0x34   : > { %p409_p11 = scmp.lt.s32.totalorder (!%p352_p9), %s1299_s11, 63  ;;  %s1879_s12 = scalar_lea.vmem (!%p352_p9), [#allocation3], %s1296_s10 }
  0x35   : > { %p1301_p12 = scmp.ne.s32.totalorder (!%p352_p9), %s1697_s14, 0 }
  0x39   : > { %s1998_s9 = smov (!%p397_p10, %s1297_s9), 47  ;;  %s2000_s11 = smov (!%p409_p11, %s1299_s11), 63 }
  0x3a   : > { %s1298_s21 = sshll.u32 %s1998_s9, 2  ;;  %s1300_s26 = sshll.u32 %s2000_s11, 2  ;;  %v1715_v32 = vmov (!%p1301_p12), 0.0  }
  0x3b   : > { %s1872_s24 = scalar_lea.vmem %s1982_s1, %s1298_s21  ;;  %s1877_s29 = scalar_lea.vmem %s1984_s3, %s1300_s26  ;;  %422 = vst [vmem:[#allocation2] sm:$0xff] (!%p1301_p12), %v1715_v32  ;;  %423 = vst [vmem:[#allocation2 + $0x8] sm:$0xff] (!%p1301_p12), %v1715_v32 }
  0x3c   : > { %421 = sbr.rel (%p1301_p12) target bundleno = 75 (0x4b), region = 77  ;;  %424 = vst [vmem:[#allocation2 + $0x10] sm:$0xff] (!%p1301_p12), %v1715_v32  ;;  %425 = vst [vmem:[#allocation2 + $0x18] sm:$0xff] (!%p1301_p12), %v1715_v32 }
  0x3d   : > { %426 = vst [vmem:[#allocation2 + $0x20] sm:$0xff] (!%p1301_p12), %v1715_v32  ;;  %427 = vst [vmem:[#allocation2 + $0x28] sm:$0xff] (!%p1301_p12), %v1715_v32 }
  0x3e   : > { %428 = vst [vmem:[#allocation2 + $0x30] sm:$0xff] (!%p1301_p12), %v1715_v32  ;;  %429 = vst [vmem:[#allocation2 + $0x38] sm:$0xff] (!%p1301_p12), %v1715_v32 }
  0x3f   : > { %430 = vst [vmem:[#allocation2 + $0x40] sm:$0xff] (!%p1301_p12), %v1715_v32  ;;  %431 = vst [vmem:[#allocation2 + $0x48] sm:$0xff] (!%p1301_p12), %v1715_v32 }
  0x40   : > { %432 = vst [vmem:[#allocation2 + $0x50] sm:$0xff] (!%p1301_p12), %v1715_v32  ;;  %433 = vst [vmem:[#allocation2 + $0x58] sm:$0xff] (!%p1301_p12), %v1715_v32 }
  0x41   : > { %434 = vst [vmem:[#allocation2 + $0x60] sm:$0xff] (!%p1301_p12), %v1715_v32  ;;  %435 = vst [vmem:[#allocation2 + $0x68] sm:$0xff] (!%p1301_p12), %v1715_v32 }
  0x42   : > { %436 = vst [vmem:[#allocation2 + $0x70] sm:$0xff] (!%p1301_p12), %v1715_v32  ;;  %437 = vst [vmem:[#allocation2 + $0x78] sm:$0xff] (!%p1301_p12), %v1715_v32 }
  0x43   : > { %438 = vst [vmem:[#allocation2 + $0x80] sm:$0xff] %v1715_v32  ;;  %439 = vst [vmem:[#allocation2 + $0x88] sm:$0xff] %v1715_v32 }
  0x44   : > { %440 = vst [vmem:[#allocation2 + $0x90] sm:$0xff] %v1715_v32  ;;  %441 = vst [vmem:[#allocation2 + $0x98] sm:$0xff] %v1715_v32 }
  0x45   : > { %442 = vst [vmem:[#allocation2 + $0xa0] sm:$0xff] %v1715_v32  ;;  %443 = vst [vmem:[#allocation2 + $0xa8] sm:$0xff] %v1715_v32 }
  0x46   : > { %444 = vst [vmem:[#allocation2 + $0xb0] sm:$0xff] %v1715_v32  ;;  %445 = vst [vmem:[#allocation2 + $0xb8] sm:$0xff] %v1715_v32 }
  0x47   : > { %446 = vst [vmem:[#allocation2 + $0xc0] sm:$0xff] %v1715_v32  ;;  %447 = vst [vmem:[#allocation2 + $0xc8] sm:$0xff] %v1715_v32 }
  0x48   : > { %448 = vst [vmem:[#allocation2 + $0xd0] sm:$0xff] %v1715_v32  ;;  %449 = vst [vmem:[#allocation2 + $0xd8] sm:$0xff] %v1715_v32 }
  0x49   : > { %450 = vst [vmem:[#allocation2 + $0xe0] sm:$0xff] %v1715_v32  ;;  %451 = vst [vmem:[#allocation2 + $0xe8] sm:$0xff] %v1715_v32 }
  0x4a   : > { %452 = vst [vmem:[#allocation2 + $0xf0] sm:$0xff] %v1715_v32  ;;  %453 = vst [vmem:[#allocation2 + $0xf8] sm:$0xff] %v1715_v32 }
  0x4b PF: > { %v1635_v33 = vld [vmem:[%s1872_s24] sm:$0xff]   ;;  %v1636_v34 = vld [vmem:[%s1872_s24 + $0x8] sm:$0xff]   ;;  %v1637_v35 = vld [vmem:[%s1872_s24 + $0x10] sm:$0xff]   ;;  %p1326_p13 = scmp.ne.s32.totalorder %s1697_s14, 2 }
  0x4c   : > { %1513 = vmatprep.subr.bf16.mxu0 %v1635_v33  ;;  %1561 = vmatprep.subr.bf16.mxu1 %v1635_v33  ;;  %v1638_v36 = vld [vmem:[%s1872_s24 + $0x18] sm:$0xff]   ;;  %v1643_v37 = vld [vmem:[%s1879_s12] sm:$0xff]   ;;  %v1640_v40 = vld [vmem:[%s1872_s24 + $0x28] sm:$0xff]  }
  0x4d   : > { %1514 = vmatpush3.bf16.msra.mxu0 %v1635_v33  ;;  %1569 = vmatpush3.bf16.msra.mxu1 %v1635_v33  ;;  %v1644_v38 = vld [vmem:[%s1879_s12 + $0x40] sm:$0xff]   ;;  %v1641_v41 = vld [vmem:[%s1872_s24 + $0x30] sm:$0xff]   ;;  %v1642_v42 = vld [vmem:[%s1872_s24 + $0x38] sm:$0xff]  }
  0x4e   : > { %1515 = vmatprep.subr.bf16.mxu0 %v1636_v34  ;;  %1562 = vmatprep.subr.bf16.mxu1 %v1636_v34  ;;  %v1639_v39 = vld [vmem:[%s1872_s24 + $0x20] sm:$0xff]   ;;  %v1645_v43 = vld [vmem:[%s1879_s12 + $0x8] sm:$0xff]   ;;  %v1647_v45 = vld [vmem:[%s1879_s12 + $0x10] sm:$0xff]  }
  0x4f   : > { %1529 = vmatprep.mubr.bf16.mxu0 %v1643_v37  ;;  %1545 = vmatprep.mubr.bf16.mxu1 %v1644_v38  ;;  %v1646_v44 = vld [vmem:[%s1879_s12 + $0x48] sm:$0xff]   ;;  %v1648_v46 = vld [vmem:[%s1879_s12 + $0x50] sm:$0xff]   ;;  %v1649_v47 = vld [vmem:[%s1879_s12 + $0x18] sm:$0xff]  }
  0x50   : > { %v1650_v48 = vld [vmem:[%s1879_s12 + $0x58] sm:$0xff]   ;;  %v1651_v49 = vld [vmem:[%s1879_s12 + $0x20] sm:$0xff]   ;;  %v1653_v51 = vld [vmem:[%s1879_s12 + $0x28] sm:$0xff]  }
  0x51   : > { %1516 = vmatpush3.bf16.msra.mxu0 %v1636_v34  ;;  %1570 = vmatpush3.bf16.msra.mxu1 %v1636_v34  ;;  %v1652_v50 = vld [vmem:[%s1879_s12 + $0x60] sm:$0xff]   ;;  %v1654_v52 = vld [vmem:[%s1879_s12 + $0x68] sm:$0xff]   ;;  %v1655_v53 = vld [vmem:[%s1879_s12 + $0x30] sm:$0xff]  }
  0x52   : > { %1517 = vmatprep.subr.bf16.mxu0 %v1637_v35  ;;  %1563 = vmatprep.subr.bf16.mxu1 %v1637_v35  ;;  %v1656_v54 = vld [vmem:[%s1879_s12 + $0x70] sm:$0xff]   ;;  %v1657_v55 = vld [vmem:[%s1879_s12 + $0x38] sm:$0xff]   ;;  %v454_v59 = vld [vmem:[#allocation2] sm:$0xff] }
  0x53   : > { %v1658_v56 = vld [vmem:[%s1879_s12 + $0x78] sm:$0xff]   ;;  %v456_v57 = vld [vmem:[#allocation2 + $0x10] sm:$0xff]  ;;  %v470_v60 = vld [vmem:[#allocation2 + $0x80] sm:$0xff] }
  0x54   : > { %v472_v58 = vld [vmem:[#allocation2 + $0x90] sm:$0xff]  ;;  %v457_v63 = vld [vmem:[#allocation2 + $0x18] sm:$0xff]  ;;  %v455_v5 = vld [vmem:[#allocation2 + $0x8] sm:$0xff] }
  0x55   : > { %1518 = vmatpush3.bf16.msra.mxu0 %v1637_v35  ;;  %1571 = vmatpush3.bf16.msra.mxu1 %v1637_v35  ;;  %v473_v0 = vld [vmem:[#allocation2 + $0x98] sm:$0xff]  ;;  %v471_v6 = vld [vmem:[#allocation2 + $0x88] sm:$0xff]  ;;  %v460_v17 = vld [vmem:[#allocation2 + $0x30] sm:$0xff] }
  0x56   : > { %1519 = vmatprep.subr.bf16.mxu0 %v1638_v36  ;;  %1564 = vmatprep.subr.bf16.mxu1 %v1638_v36  ;;  %v476_v18 = vld [vmem:[#allocation2 + $0xb0] sm:$0xff]  ;;  %v458_v19 = vld [vmem:[#allocation2 + $0x20] sm:$0xff]  ;;  %v461_v23 = vld [vmem:[#allocation2 + $0x38] sm:$0xff] }
  0x57   : > { %v474_v20 = vld [vmem:[#allocation2 + $0xa0] sm:$0xff]  ;;  %v477_v24 = vld [vmem:[#allocation2 + $0xb8] sm:$0xff]  ;;  %v459_v29 = vld [vmem:[#allocation2 + $0x28] sm:$0xff] }
  0x58   : > { %v475_v30 = vld [vmem:[#allocation2 + $0xa8] sm:$0xff] }
  0x59   : > { %1520 = vmatpush3.bf16.msra.mxu0 %v1638_v36  ;;  %1572 = vmatpush3.bf16.msra.mxu1 %v1638_v36 }
  0x5a   : > { %1521 = vmatprep.subr.bf16.mxu0 %v1639_v39  ;;  %1565 = vmatprep.subr.bf16.mxu1 %v1639_v39 }
  0x5d   : > { %1522 = vmatpush3.bf16.msra.mxu0 %v1639_v39  ;;  %1573 = vmatpush3.bf16.msra.mxu1 %v1639_v39 }
  0x5e   : > { %1523 = vmatprep.subr.bf16.mxu0 %v1640_v40  ;;  %1566 = vmatprep.subr.bf16.mxu1 %v1640_v40 }
  0x61   : > { %1524 = vmatpush3.bf16.msra.mxu0 %v1640_v40  ;;  %1574 = vmatpush3.bf16.msra.mxu1 %v1640_v40 }
  0x62   : > { %1525 = vmatprep.subr.bf16.mxu0 %v1641_v41  ;;  %1567 = vmatprep.subr.bf16.mxu1 %v1641_v41 }
  0x65   : > { %1526 = vmatpush3.bf16.msra.mxu0 %v1641_v41  ;;  %1575 = vmatpush3.bf16.msra.mxu1 %v1641_v41  ;;  %v464_v41 = vld [vmem:[#allocation2 + $0x50] sm:$0xff] }
  0x66   : > { %1527 = vmatprep.subr.bf16.mxu0 %v1642_v42  ;;  %1568 = vmatprep.subr.bf16.mxu1 %v1642_v42 }
  0x69   : > { %1528 = vmatpush3.bf16.msra.mxu0 %v1642_v42  ;;  %1576 = vmatpush3.bf16.msra.mxu1 %v1642_v42  ;;  %v480_v42 = vld [vmem:[#allocation2 + $0xd0] sm:$0xff] }
  0x6c   : > { %1530 = vmatmul.mubr.bf16.vlgmr.msra.gmra.mrb[0].mxu0 %v1645_v43  ;;  %1546 = vmatmul.mubr.bf16.vlgmr.msra.gmra.mrb[0].mxu1 %v1646_v44  ;;  %v462_v43 = vld [vmem:[#allocation2 + $0x40] sm:$0xff] }
  0x6d   : > { %1533 = vmatprep.mubr.bf16.mxu0 %v1647_v45  ;;  %1549 = vmatprep.mubr.bf16.mxu1 %v1648_v46  ;;  %v478_v44 = vld [vmem:[#allocation2 + $0xc0] sm:$0xff] }
  0x74   : > { %1534 = vmatmul.mubr.bf16.gmra.mrb[4].mxu0 %v1649_v47  ;;  %1550 = vmatmul.mubr.bf16.gmra.mrb[4].mxu1 %v1650_v48  ;;  %v465_v47 = vld [vmem:[#allocation2 + $0x58] sm:$0xff] }
  0x75   : > { %1537 = vmatprep.mubr.bf16.mxu0 %v1651_v49  ;;  %1553 = vmatprep.mubr.bf16.mxu1 %v1652_v50  ;;  %v481_v48 = vld [vmem:[#allocation2 + $0xd8] sm:$0xff] }
  0x7c   : > { %1538 = vmatmul.mubr.bf16.gmra.mrb[8].mxu0 %v1653_v51  ;;  %1554 = vmatmul.mubr.bf16.gmra.mrb[8].mxu1 %v1654_v52 }
  0x7d   : > { %1541 = vmatprep.mubr.bf16.mxu0 %v1655_v53  ;;  %1557 = vmatprep.mubr.bf16.mxu1 %v1656_v54  ;;  %v463_v53 = vld [vmem:[#allocation2 + $0x48] sm:$0xff] }
  0x7e   : > { %v479_v54 = vld [vmem:[#allocation2 + $0xc8] sm:$0xff] }
  0x84   : > { %1542 = vmatmul.mubr.bf16.gmra.mrb[12].mxu0 %v1657_v55  ;;  %1558 = vmatmul.mubr.bf16.gmra.mrb[12].mxu1 %v1658_v56 }
 0x13f   : > { %v1531_v61 = vpop.f32.mrb[0].mxu0  ;;  %v1547_v62 = vpop.f32.mrb[0].mxu1 }
 0x140   : > { %v841_v1 = vadd.f32 %v1531_v61, %v456_v57  ;;  %v857_v2 = vadd.f32 %v1547_v62, %v472_v58  ;;  %v712_v3 = vpop.f32.mrb[1].mxu0  ;;  %v776_v4 = vpop.f32.mrb[1].mxu1 }
 0x141   : > { %v839_v7 = vadd.f32 %v712_v3, %v454_v59  ;;  %v855_v8 = vadd.f32 %v776_v4, %v470_v60  ;;  %v1532_v9 = vpop.f32.mrb[2].mxu0  ;;  %v1548_v10 = vpop.f32.mrb[2].mxu1  ;;  %v466_v3 = vld [vmem:[#allocation2 + $0x60] sm:$0xff] }
 0x142   : > { %873 = vst [vmem:[#allocation2 + $0x10] sm:$0xff] %v841_v1  ;;  %889 = vst [vmem:[#allocation2 + $0x90] sm:$0xff] %v857_v2  ;;  %v842_v11 = vadd.f32 %v1532_v9, %v457_v63  ;;  %v858_v12 = vadd.f32 %v1548_v10, %v473_v0  ;;  %v715_v13 = vpop.f32.mrb[3].mxu0  ;;  %v779_v14 = vpop.f32.mrb[3].mxu1  ;;  %v468_v1 = vld [vmem:[#allocation2 + $0x70] sm:$0xff]  ;;  %v482_v4 = vld [vmem:[#allocation2 + $0xe0] sm:$0xff] }
 0x143   : > { %871 = vst [vmem:[#allocation2] sm:$0xff] %v839_v7  ;;  %887 = vst [vmem:[#allocation2 + $0x80] sm:$0xff] %v855_v8  ;;  %v840_v15 = vadd.f32 %v715_v13, %v455_v5  ;;  %v856_v16 = vadd.f32 %v779_v14, %v471_v6  ;;  %v484_v2 = vld [vmem:[#allocation2 + $0xf0] sm:$0xff]  ;;  %v469_v7 = vld [vmem:[#allocation2 + $0x78] sm:$0xff] }
 0x144   : > { %874 = vst [vmem:[#allocation2 + $0x18] sm:$0xff] %v842_v11  ;;  %890 = vst [vmem:[#allocation2 + $0x98] sm:$0xff] %v858_v12  ;;  %v485_v8 = vld [vmem:[#allocation2 + $0xf8] sm:$0xff]  ;;  %v467_v13 = vld [vmem:[#allocation2 + $0x68] sm:$0xff] }
 0x145   : > { %872 = vst [vmem:[#allocation2 + $0x8] sm:$0xff] %v840_v15  ;;  %888 = vst [vmem:[#allocation2 + $0x88] sm:$0xff] %v856_v16  ;;  %v483_v14 = vld [vmem:[#allocation2 + $0xe8] sm:$0xff] }
 0x147   : > { %v1535_v21 = vpop.f32.mrb[4].mxu0  ;;  %v1551_v22 = vpop.f32.mrb[4].mxu1 }
 0x148   : > { %v845_v25 = vadd.f32 %v1535_v21, %v460_v17  ;;  %v861_v26 = vadd.f32 %v1551_v22, %v476_v18  ;;  %v728_v27 = vpop.f32.mrb[5].mxu0  ;;  %v792_v28 = vpop.f32.mrb[5].mxu1 }
 0x149   : > { %v843_v31 = vadd.f32 %v728_v27, %v458_v19  ;;  %v859_v32 = vadd.f32 %v792_v28, %v474_v20  ;;  %v1536_v33 = vpop.f32.mrb[6].mxu0  ;;  %v1552_v34 = vpop.f32.mrb[6].mxu1  ;;  %v1910_v27 = vld [vmem:[%s1983_s2] ss:$0 sm:$0xff] (!%p1326_p13) }
 0x14a   : > { %877 = vst [vmem:[#allocation2 + $0x30] sm:$0xff] %v845_v25  ;;  %893 = vst [vmem:[#allocation2 + $0xb0] sm:$0xff] %v861_v26  ;;  %v846_v35 = vadd.f32 %v1536_v33, %v461_v23  ;;  %v862_v36 = vadd.f32 %v1552_v34, %v477_v24  ;;  %v731_v37 = vpop.f32.mrb[7].mxu0  ;;  %v795_v38 = vpop.f32.mrb[7].mxu1  ;;  %v907_v25 = vld [vmem:[#allocation2] sm:$0xff] (!%p1326_p13) }
 0x14b   : > { %875 = vst [vmem:[#allocation2 + $0x20] sm:$0xff] %v843_v31  ;;  %891 = vst [vmem:[#allocation2 + $0xa0] sm:$0xff] %v859_v32  ;;  %v844_v39 = vadd.f32 %v731_v37, %v459_v29  ;;  %v860_v40 = vadd.f32 %v795_v38, %v475_v30  ;;  %v946_v28 = vadd.f32 (!%p1326_p13), %v1910_v27, %v907_v25  ;;  %v909_v30 = vld [vmem:[#allocation2 + $0x10] sm:$0xff] (!%p1326_p13)  ;;  %v910_v31 = vld [vmem:[#allocation2 + $0x18] sm:$0xff] (!%p1326_p13) }
 0x14c   : > { %878 = vst [vmem:[#allocation2 + $0x38] sm:$0xff] %v846_v35  ;;  %894 = vst [vmem:[#allocation2 + $0xb8] sm:$0xff] %v862_v36  ;;  %v908_v26 = vld [vmem:[#allocation2 + $0x8] sm:$0xff] (!%p1326_p13)  ;;  %v948_v33 = vadd.f32 (!%p1326_p13), %v1910_v27, %v909_v30  ;;  %v949_v34 = vadd.f32 (!%p1326_p13), %v1910_v27, %v910_v31 }
 0x14d   : > { %876 = vst [vmem:[#allocation2 + $0x28] sm:$0xff] %v844_v39  ;;  %892 = vst [vmem:[#allocation2 + $0xa8] sm:$0xff] %v860_v40  ;;  %v947_v29 = vadd.f32 (!%p1326_p13), %v1910_v27, %v908_v26  ;;  %v978_v39 = vmax.f32 (!%p1326_p13), %v946_v28, 0.0 }
 0x14f   : > { %v1539_v45 = vpop.f32.mrb[8].mxu0  ;;  %v1555_v46 = vpop.f32.mrb[8].mxu1  ;;  %v979_v40 = vmax.f32 (!%p1326_p13), %v947_v29, 0.0 }
 0x150   : > { %v849_v49 = vadd.f32 %v1539_v45, %v464_v41  ;;  %v865_v50 = vadd.f32 %v1555_v46, %v480_v42  ;;  %v744_v51 = vpop.f32.mrb[9].mxu0  ;;  %v808_v52 = vpop.f32.mrb[9].mxu1  ;;  %v980_v46 = vmax.f32 (!%p1326_p13), %v948_v33, 0.0 }
 0x151   : > { %v847_v55 = vadd.f32 %v744_v51, %v462_v43  ;;  %v863_v56 = vadd.f32 %v808_v52, %v478_v44  ;;  %v1540_v57 = vpop.f32.mrb[10].mxu0  ;;  %v1556_v58 = vpop.f32.mrb[10].mxu1  ;;  %v913_v37 = vld [vmem:[#allocation2 + $0x30] sm:$0xff] (!%p1326_p13)  ;;  %v1397_v52 = vpack.c.bf16 (!%p1326_p13), %v979_v40, %v978_v39 }
 0x152   : > { %881 = vst [vmem:[#allocation2 + $0x50] sm:$0xff] %v849_v49  ;;  %897 = vst [vmem:[#allocation2 + $0xd0] sm:$0xff] %v865_v50  ;;  %v850_v59 = vadd.f32 %v1540_v57, %v465_v47  ;;  %v866_v60 = vadd.f32 %v1556_v58, %v481_v48  ;;  %v747_v61 = vpop.f32.mrb[11].mxu0  ;;  %v811_v62 = vpop.f32.mrb[11].mxu1  ;;  %v911_v32 = vld [vmem:[#allocation2 + $0x20] sm:$0xff] (!%p1326_p13)  ;;  %v952_v42 = vadd.f32 (!%p1326_p13), %v1910_v27, %v913_v37  ;;  %v981_v47 = vmax.f32 (!%p1326_p13), %v949_v34, 0.0 }
 0x153   : > { %879 = vst [vmem:[#allocation2 + $0x40] sm:$0xff] %v847_v55  ;;  %895 = vst [vmem:[#allocation2 + $0xc0] sm:$0xff] %v863_v56  ;;  %v848_v63 = vadd.f32 %v747_v61, %v463_v53  ;;  %v864_v0 = vadd.f32 %v811_v62, %v479_v54  ;;  %v950_v36 = vadd.f32 (!%p1326_p13), %v1910_v27, %v911_v32  ;;  %v914_v38 = vld [vmem:[#allocation2 + $0x38] sm:$0xff] (!%p1326_p13)  ;;  %v929_v25 = vld [vmem:[#allocation2 + $0xb0] sm:$0xff] (!%p1326_p13) }
 0x154   : > { %882 = vst [vmem:[#allocation2 + $0x58] sm:$0xff] %v850_v59  ;;  %898 = vst [vmem:[#allocation2 + $0xd8] sm:$0xff] %v866_v60  ;;  %v912_v35 = vld [vmem:[#allocation2 + $0x28] sm:$0xff] (!%p1326_p13)  ;;  %v953_v49 = vadd.f32 (!%p1326_p13), %v1910_v27, %v914_v38  ;;  %v984_v54 = vmax.f32 (!%p1326_p13), %v952_v42, 0.0  ;;  %v1402_v57 = vpack.c.bf16 (!%p1326_p13), %v981_v47, %v980_v46  ;;  %v930_v26 = vld [vmem:[#allocation2 + $0xb8] sm:$0xff] (!%p1326_p13) }
 0x155   : > { %880 = vst [vmem:[#allocation2 + $0x48] sm:$0xff] %v848_v63  ;;  %896 = vst [vmem:[#allocation2 + $0xc8] sm:$0xff] %v864_v0  ;;  %v951_v41 = vadd.f32 (!%p1326_p13), %v1910_v27, %v912_v35  ;;  %v982_v48 = vmax.f32 (!%p1326_p13), %v950_v36, 0.0  ;;  %v969_v42 = vadd.f32 (!%p1326_p13), %v1910_v27, %v930_v26 }
 0x156   : > { %v985_v58 = vmax.f32 (!%p1326_p13), %v953_v49, 0.0  ;;  %1398 = vst [vmem:[%s1877_s29] sm:$0xff] (!%p1326_p13), %v1397_v52   ;;  %1474 = vst [vmem:[%s1877_s29 + $0x8] sm:$0xff] (!%p1326_p13), %v1402_v57  }
 0x157   : > { %v1543_v5 = vpop.f32.mrb[12].mxu0  ;;  %v1559_v6 = vpop.f32.mrb[12].mxu1  ;;  %906 = sbr.rel (%p1326_p13) target bundleno = 366 (0x16e), region = 81  ;;  %v983_v53 = vmax.f32 (!%p1326_p13), %v951_v41, 0.0  ;;  %v968_v41 = vadd.f32 (!%p1326_p13), %v1910_v27, %v929_v25  ;;  %v1001_v52 = vmax.f32 (!%p1326_p13), %v969_v42, 0.0 }
 0x158   : > { %v853_v9 = vadd.f32 %v1543_v5, %v468_v1  ;;  %v869_v10 = vadd.f32 %v1559_v6, %v484_v2  ;;  %v760_v11 = vpop.f32.mrb[13].mxu0  ;;  %v824_v12 = vpop.f32.mrb[13].mxu1  ;;  %v1412_v5 = vpack.c.bf16 (!%p1326_p13), %v985_v58, %v984_v54 }
 0x159   : > { %v851_v15 = vadd.f32 %v760_v11, %v466_v3  ;;  %v867_v16 = vadd.f32 %v824_v12, %v482_v4  ;;  %v1544_v17 = vpop.f32.mrb[14].mxu0  ;;  %v1560_v18 = vpop.f32.mrb[14].mxu1  ;;  %v917_v45 = vld [vmem:[#allocation2 + $0x50] sm:$0xff] (!%p1326_p13)  ;;  %v1407_v63 = vpack.c.bf16 (!%p1326_p13), %v983_v53, %v982_v48  ;;  %v923_v3 = vld [vmem:[#allocation2 + $0x80] sm:$0xff] (!%p1326_p13)  ;;  %v924_v4 = vld [vmem:[#allocation2 + $0x88] sm:$0xff] (!%p1326_p13) }
 0x15a   : > { %885 = vst [vmem:[#allocation2 + $0x70] sm:$0xff] %v853_v9  ;;  %901 = vst [vmem:[#allocation2 + $0xf0] sm:$0xff] %v869_v10  ;;  %v854_v19 = vadd.f32 %v1544_v17, %v469_v7  ;;  %v870_v20 = vadd.f32 %v1560_v18, %v485_v8  ;;  %v763_v21 = vpop.f32.mrb[15].mxu0  ;;  %v827_v22 = vpop.f32.mrb[15].mxu1  ;;  %v915_v43 = vld [vmem:[#allocation2 + $0x40] sm:$0xff] (!%p1326_p13)  ;;  %v956_v60 = vadd.f32 (!%p1326_p13), %v1910_v27, %v917_v45  ;;  %v925_v9 = vld [vmem:[#allocation2 + $0x90] sm:$0xff] (!%p1326_p13) }
 0x15b   : > { %883 = vst [vmem:[#allocation2 + $0x60] sm:$0xff] %v851_v15  ;;  %899 = vst [vmem:[#allocation2 + $0xe0] sm:$0xff] %v867_v16  ;;  %v852_v23 = vadd.f32 %v763_v21, %v467_v13  ;;  %v868_v24 = vadd.f32 %v827_v22, %v483_v14  ;;  %v918_v50 = vld [vmem:[#allocation2 + $0x58] sm:$0xff] (!%p1326_p13)  ;;  %v954_v55 = vadd.f32 (!%p1326_p13), %v1910_v27, %v915_v43  ;;  %v931_v32 = vld [vmem:[#allocation2 + $0xc0] sm:$0xff] (!%p1326_p13) }
 0x15c   : > { %886 = vst [vmem:[#allocation2 + $0x78] sm:$0xff] %v854_v19  ;;  %902 = vst [vmem:[#allocation2 + $0xf8] sm:$0xff] %v870_v20  ;;  %v916_v44 = vld [vmem:[#allocation2 + $0x48] sm:$0xff] (!%p1326_p13)  ;;  %v957_v1 = vadd.f32 (!%p1326_p13), %v1910_v27, %v918_v50  ;;  %v988_v7 = vmax.f32 (!%p1326_p13), %v956_v60, 0.0  ;;  %v926_v14 = vld [vmem:[#allocation2 + $0x98] sm:$0xff] (!%p1326_p13)  ;;  %v962_v17 = vadd.f32 (!%p1326_p13), %v1910_v27, %v923_v3  ;;  %v963_v18 = vadd.f32 (!%p1326_p13), %v1910_v27, %v924_v4 }
 0x15d   : > { %884 = vst [vmem:[#allocation2 + $0x68] sm:$0xff] %v852_v23  ;;  %900 = vst [vmem:[#allocation2 + $0xe8] sm:$0xff] %v868_v24  ;;  %v955_v59 = vadd.f32 (!%p1326_p13), %v1910_v27, %v916_v44  ;;  %v986_v0 = vmax.f32 (!%p1326_p13), %v954_v55, 0.0  ;;  %v927_v19 = vld [vmem:[#allocation2 + $0xa0] sm:$0xff] (!%p1326_p13)  ;;  %v928_v20 = vld [vmem:[#allocation2 + $0xa8] sm:$0xff] (!%p1326_p13)  ;;  %v964_v24 = vadd.f32 (!%p1326_p13), %v1910_v27, %v925_v9  ;;  %v965_v31 = vadd.f32 (!%p1326_p13), %v1910_v27, %v926_v14 }
 0x15e   : > { %1475 = vst [vmem:[%s1877_s29 + $0x10] sm:$0xff] %v1407_v63   ;;  %v989_v10 = vmax.f32 %v957_v1, 0.0  ;;  %1476 = vst [vmem:[%s1877_s29 + $0x18] sm:$0xff] %v1412_v5   ;;  %v994_v29 = vmax.f32 %v962_v17, 0.0  ;;  %v995_v30 = vmax.f32 %v963_v18, 0.0  ;;  %v932_v33 = vld [vmem:[#allocation2 + $0xc8] sm:$0xff]  ;;  %v966_v36 = vadd.f32 %v1910_v27, %v927_v19 }
 0x15f   : > { %v987_v6 = vmax.f32 %v955_v59, 0.0  ;;  %v996_v35 = vmax.f32 %v964_v24, 0.0  ;;  %v967_v37 = vadd.f32 %v1910_v27, %v928_v20  ;;  %v933_v38 = vld [vmem:[#allocation2 + $0xd0] sm:$0xff]  ;;  %v997_v40 = vmax.f32 %v965_v31, 0.0  ;;  %v934_v43 = vld [vmem:[#allocation2 + $0xd8] sm:$0xff] }
 0x160   : > { %v1422_v21 = vpack.c.bf16 %v989_v10, %v988_v7  ;;  %v1437_v39 = vpack.c.bf16 %v995_v30, %v994_v29  ;;  %v998_v44 = vmax.f32 %v966_v36, 0.0  ;;  %v970_v46 = vadd.f32 %v1910_v27, %v931_v32 }
 0x161   : > { %v921_v61 = vld [vmem:[#allocation2 + $0x70] sm:$0xff]  ;;  %v1417_v15 = vpack.c.bf16 %v987_v6, %v986_v0  ;;  %v999_v45 = vmax.f32 %v967_v37, 0.0  ;;  %v971_v47 = vadd.f32 %v1910_v27, %v932_v33  ;;  %v1442_v50 = vpack.c.bf16 %v997_v40, %v996_v35 }
 0x162   : > { %v919_v51 = vld [vmem:[#allocation2 + $0x60] sm:$0xff]  ;;  %v960_v12 = vadd.f32 %v1910_v27, %v921_v61  ;;  %1478 = vst [vmem:[%s1877_s29 + $0x28] sm:$0xff] %v1422_v21   ;;  %1481 = vst [vmem:[%s1877_s29 + $0x40] sm:$0xff] %v1437_v39   ;;  %v972_v53 = vadd.f32 %v1910_v27, %v933_v38  ;;  %v937_v54 = vld [vmem:[#allocation2 + $0xf0] sm:$0xff]  ;;  %v1002_v57 = vmax.f32 %v970_v46, 0.0  ;;  %v973_v59 = vadd.f32 %v1910_v27, %v934_v43 }
 0x163   : > { %v922_v62 = vld [vmem:[#allocation2 + $0x78] sm:$0xff]  ;;  %v958_v2 = vadd.f32 %v1910_v27, %v919_v51  ;;  %1477 = vst [vmem:[%s1877_s29 + $0x20] sm:$0xff] %v1417_v15   ;;  %v935_v48 = vld [vmem:[#allocation2 + $0xe0] sm:$0xff]  ;;  %v1000_v51 = vmax.f32 %v968_v41, 0.0  ;;  %v1003_v58 = vmax.f32 %v971_v47, 0.0  ;;  %1482 = vst [vmem:[%s1877_s29 + $0x48] sm:$0xff] %v1442_v50  }
 0x164   : > { %v920_v56 = vld [vmem:[#allocation2 + $0x68] sm:$0xff]  ;;  %v961_v13 = vadd.f32 %v1910_v27, %v922_v62  ;;  %v992_v22 = vmax.f32 %v960_v12, 0.0  ;;  %v938_v55 = vld [vmem:[#allocation2 + $0xf8] sm:$0xff]  ;;  %v1004_v61 = vmax.f32 %v972_v53, 0.0  ;;  %v974_v62 = vadd.f32 %v1910_v27, %v935_v48 }
 0x165   : > { %v959_v8 = vadd.f32 %v1910_v27, %v920_v56  ;;  %v990_v11 = vmax.f32 %v958_v2, 0.0  ;;  %v936_v49 = vld [vmem:[#allocation2 + $0xe8] sm:$0xff]  ;;  %v1447_v56 = vpack.c.bf16 %v999_v45, %v998_v44  ;;  %v1452_v60 = vpack.c.bf16 %v1001_v52, %v1000_v51 }
 0x166   : > { %v993_v23 = vmax.f32 %v961_v13, 0.0  ;;  %v975_v63 = vadd.f32 %v1910_v27, %v936_v49  ;;  %v1457_v0 = vpack.c.bf16 %v1003_v58, %v1002_v57  ;;  %v1005_v1 = vmax.f32 %v973_v59, 0.0 }
 0x167   : > { %v991_v16 = vmax.f32 %v959_v8, 0.0  ;;  %1483 = vst [vmem:[%s1877_s29 + $0x50] sm:$0xff] %v1447_v56   ;;  %v976_v2 = vadd.f32 %v1910_v27, %v937_v54  ;;  %v977_v3 = vadd.f32 %v1910_v27, %v938_v55  ;;  %1484 = vst [vmem:[%s1877_s29 + $0x58] sm:$0xff] %v1452_v60   ;;  %v1006_v4 = vmax.f32 %v974_v62, 0.0 }
 0x168   : > { %v1432_v34 = vpack.c.bf16 %v993_v23, %v992_v22  ;;  %v1007_v5 = vmax.f32 %v975_v63, 0.0  ;;  %1485 = vst [vmem:[%s1877_s29 + $0x60] sm:$0xff] %v1457_v0   ;;  %v1462_v6 = vpack.c.bf16 %v1005_v1, %v1004_v61 }
 0x169   : > { %v1427_v28 = vpack.c.bf16 %v991_v16, %v990_v11  ;;  %v1008_v7 = vmax.f32 %v976_v2, 0.0  ;;  %v1009_v8 = vmax.f32 %v977_v3, 0.0 }
 0x16a   : > { %1480 = vst [vmem:[%s1877_s29 + $0x38] sm:$0xff] %v1432_v34   ;;  %v1467_v9 = vpack.c.bf16 %v1007_v5, %v1006_v4  ;;  %1486 = vst [vmem:[%s1877_s29 + $0x68] sm:$0xff] %v1462_v6  }
 0x16b   : > { %1479 = vst [vmem:[%s1877_s29 + $0x30] sm:$0xff] %v1427_v28   ;;  %v1472_v10 = vpack.c.bf16 %v1009_v8, %v1008_v7 }
 0x16c   : > { %1487 = vst [vmem:[%s1877_s29 + $0x70] sm:$0xff] %v1467_v9  }
 0x16d   : > { %1488 = vst [vmem:[%s1877_s29 + $0x78] sm:$0xff] %v1472_v10  }
 0x16e PF: > { %s13_s18 = sadd.s32 1, %s1713_s18   ;;  %s1985_s12 = smov %s1693_s13 }
 0x16f   : > { %p10_p0 = scmp.ge.s32.totalorder %s13_s18, 8   ;;  %s1986_s13 = smov %s1787_s25 }
 0x170   : > { %s1987_s14 = smov %s1705_s16  ;;  %s1988_s15 = smov %s1709_s17 }
 0x171   : > { %s1989_s16 = smov %s1992_s19  ;;  %s1990_s17 = smov %s1996_s20 }
 0x172   :  { %12 = sbr.rel (!%p10_p0) target bundleno = 4 (0x4), region = 122 }

// kernel: se_basic_block_forward.4
= control target key start
LH: loop header
LB: loop body
LE: loop exit
PB: predicated region body
PF: predicated region fallthrough
CT: control target
= control target key end

     0   :  { %s1417_s12 = smov 0   ;;  %s1419_s13 = smov 0   ;;  %s1678_s0 = inlined_call_operand.vmem [shape: bf16[512,384], index: 0, kind: input, shape index: {}]   ;;  %s1679_s1 = inlined_call_operand.vmem [shape: bf16[384,128], index: 1, kind: input, shape index: {}]   ;;  %s1680_s2 = inlined_call_operand.vmem [shape: f32[1,128], index: 2, kind: input, shape index: {}]   ;;  %s1681_s3 = inlined_call_operand.vmem [shape: f32[512,128], index: 3, kind: output, shape index: {}]  }
   0x1   :  { %s1421_s14 = smov 0   ;;  %s1423_s15 = smov 0  }
   0x2   :  { %s1425_s16 = smov 0   ;;  %s1427_s17 = smov 0  }
   0x3   :  { %s1429_s18 = smov 0  }
   0x4 LB: > { %s25_s19 = sadd.s32 1, %s1386_s16  ;;  %s32_s20 = sadd.s32 1, %s1390_s17  ;;  %s1394_s18 = sphi %s1429_s18, %s13_s18   ;;  %s1390_s17 = sphi %s1427_s17, %s1687_s17   ;;  %s1386_s16 = sphi %s1425_s16, %s1686_s16   ;;  %s1382_s15 = sphi %s1423_s15, %s1685_s15   ;;  %s1378_s14 = sphi %s1421_s14, %s1684_s14   ;;  %s1374_s13 = sphi %s1419_s13, %s1683_s13   ;;  %s1370_s12 = sphi %s1417_s12, %s1682_s12  }
   0x5   : > { %p26_p0 = scmp.ge.s32.totalorder %s25_s19, 3  ;;  %p48_p1 = scmp.ne.s32.totalorder %s1374_s13, %s1370_s12 }
   0x6   : > { %p49_p2 = scmp.eq.s32.totalorder %s1394_s18, 0  ;;  %s41_s24 = sadd.s32 1, %s1374_s13 }
   0x7   : > { %s1689_s19 = smov (%p26_p0, %s25_s19), 0  ;;  %s1691_s20 = smov (!%p26_p0, %s32_s20), %s1390_s17 }
   0x8   : > { %p50_p3 = por %p49_p2, %p48_p1  ;;  %p34_p4 = scmp.ge.s32.totalorder %s1691_s20, 2 }
   0x9   : > { %s37_s21 = ssub.s32 %s1386_s16, %s1689_s19  ;;  %p1130_p6 = scmp.ge.s32.totalorder %s1394_s18, 6 }
   0xa   : > { %s1693_s20 = smov (%p34_p4, %s1691_s20), 0 }
   0xb   : > { %s36_s22 = ssub.s32 %s1390_s17, %s1693_s20  ;;  %162 = sbr.rel (%p1130_p6) target bundleno = 46 (0x2e), region = 20 }
   0xc   : > { %s38_s23 = sor.u32 %s37_s21, %s36_s22 }
   0xd   : > { %p39_p5 = scmp.eq.s32.totalorder %s38_s23, 0 }
   0xf   : > { %s1468_s25 = scalar_select %p39_p5, %s1374_s13, %s41_s24  }
  0x12   : > { %165 = sbr.rel (!%p50_p3) target bundleno = 46 (0x2e), region = 24  ;;  %s167_s26 = sand.u32 (%p50_p3), 1, %s1374_s13  }
  0x13   : > { %s1258_s27 = smul.u32 (%p50_p3), 96, %s1390_s17  ;;  %s1131_s28 = sshll.u32 (%p50_p3), %s167_s26, 7 }
  0x14   : > { %s1482_s7 = scalar_lea.vmem (%p50_p3), [#allocation3], %s1131_s28 }
  0x15   : > { %s172_s29 = sadd.s32 (%p50_p3), %s1386_s16, %s1258_s27 }
  0x16   : > { %s1134_s30 = sshll.u32 (%p50_p3), %s172_s29, 2 }
  0x17   : > { %s1477_s6 = scalar_lea.vmem (%p50_p3), %s1678_s0, %s1134_s30 }
  0x18   : > { %v190_v0 = vld [vmem:[%s1477_s6] sm:$0xf] (%p50_p3)  ;;  %v192_v1 = vld [vmem:[%s1477_s6 + $0xc] sm:$0xf] (%p50_p3)  ;;  %v194_v2 = vld [vmem:[%s1477_s6 + $0x18] sm:$0xf] (%p50_p3) }
  0x19   : > { %191 = vst [vmem:[%s1482_s7] sm:$0xf] %v190_v0  ;;  %193 = vst [vmem:[%s1482_s7 + $0x4] sm:$0xf] %v192_v1  ;;  %v196_v3 = vld [vmem:[%s1477_s6 + $0x24] sm:$0xf] }
  0x1a   : > { %195 = vst [vmem:[%s1482_s7 + $0x8] sm:$0xf] %v194_v2  ;;  %v198_v4 = vld [vmem:[%s1477_s6 + $0x30] sm:$0xf]  ;;  %v200_v5 = vld [vmem:[%s1477_s6 + $0x3c] sm:$0xf] }
  0x1b   : > { %197 = vst [vmem:[%s1482_s7 + $0xc] sm:$0xf] %v196_v3  ;;  %199 = vst [vmem:[%s1482_s7 + $0x10] sm:$0xf] %v198_v4  ;;  %v202_v6 = vld [vmem:[%s1477_s6 + $0x48] sm:$0xf] }
  0x1c   : > { %201 = vst [vmem:[%s1482_s7 + $0x14] sm:$0xf] %v200_v5  ;;  %v204_v7 = vld [vmem:[%s1477_s6 + $0x54] sm:$0xf]  ;;  %v206_v8 = vld [vmem:[%s1477_s6 + $0x60] sm:$0xf] }
  0x1d   : > { %203 = vst [vmem:[%s1482_s7 + $0x18] sm:$0xf] %v202_v6  ;;  %205 = vst [vmem:[%s1482_s7 + $0x1c] sm:$0xf] %v204_v7  ;;  %v208_v9 = vld [vmem:[%s1477_s6 + $0x6c] sm:$0xf] }
  0x1e   : > { %207 = vst [vmem:[%s1482_s7 + $0x20] sm:$0xf] %v206_v8  ;;  %v210_v10 = vld [vmem:[%s1477_s6 + $0x78] sm:$0xf]  ;;  %v212_v11 = vld [vmem:[%s1477_s6 + $0x84] sm:$0xf] }
  0x1f   : > { %209 = vst [vmem:[%s1482_s7 + $0x24] sm:$0xf] %v208_v9  ;;  %211 = vst [vmem:[%s1482_s7 + $0x28] sm:$0xf] %v210_v10  ;;  %v214_v12 = vld [vmem:[%s1477_s6 + $0x90] sm:$0xf] }
  0x20   : > { %213 = vst [vmem:[%s1482_s7 + $0x2c] sm:$0xf] %v212_v11  ;;  %v216_v13 = vld [vmem:[%s1477_s6 + $0x9c] sm:$0xf]  ;;  %v218_v14 = vld [vmem:[%s1477_s6 + $0xa8] sm:$0xf] }
  0x21   : > { %215 = vst [vmem:[%s1482_s7 + $0x30] sm:$0xf] %v214_v12  ;;  %217 = vst [vmem:[%s1482_s7 + $0x34] sm:$0xf] %v216_v13  ;;  %v220_v15 = vld [vmem:[%s1477_s6 + $0xb4] sm:$0xf] }
  0x22   : > { %219 = vst [vmem:[%s1482_s7 + $0x38] sm:$0xf] %v218_v14  ;;  %v222_v16 = vld [vmem:[%s1477_s6 + $0xc0] sm:$0xf]  ;;  %v224_v17 = vld [vmem:[%s1477_s6 + $0xcc] sm:$0xf] }
  0x23   : > { %221 = vst [vmem:[%s1482_s7 + $0x3c] sm:$0xf] %v220_v15  ;;  %223 = vst [vmem:[%s1482_s7 + $0x40] sm:$0xf] %v222_v16  ;;  %v226_v18 = vld [vmem:[%s1477_s6 + $0xd8] sm:$0xf] }
  0x24   : > { %225 = vst [vmem:[%s1482_s7 + $0x44] sm:$0xf] %v224_v17  ;;  %v228_v19 = vld [vmem:[%s1477_s6 + $0xe4] sm:$0xf]  ;;  %v230_v20 = vld [vmem:[%s1477_s6 + $0xf0] sm:$0xf] }
  0x25   : > { %227 = vst [vmem:[%s1482_s7 + $0x48] sm:$0xf] %v226_v18  ;;  %229 = vst [vmem:[%s1482_s7 + $0x4c] sm:$0xf] %v228_v19  ;;  %v232_v21 = vld [vmem:[%s1477_s6 + $0xfc] sm:$0xf] }
  0x26   : > { %231 = vst [vmem:[%s1482_s7 + $0x50] sm:$0xf] %v230_v20  ;;  %v234_v22 = vld [vmem:[%s1477_s6 + $0x108] sm:$0xf]  ;;  %v236_v23 = vld [vmem:[%s1477_s6 + $0x114] sm:$0xf] }
  0x27   : > { %233 = vst [vmem:[%s1482_s7 + $0x54] sm:$0xf] %v232_v21  ;;  %235 = vst [vmem:[%s1482_s7 + $0x58] sm:$0xf] %v234_v22  ;;  %v238_v24 = vld [vmem:[%s1477_s6 + $0x120] sm:$0xf] }
  0x28   : > { %237 = vst [vmem:[%s1482_s7 + $0x5c] sm:$0xf] %v236_v23  ;;  %v240_v25 = vld [vmem:[%s1477_s6 + $0x12c] sm:$0xf]  ;;  %v242_v26 = vld [vmem:[%s1477_s6 + $0x138] sm:$0xf] }
  0x29   : > { %239 = vst [vmem:[%s1482_s7 + $0x60] sm:$0xf] %v238_v24  ;;  %241 = vst [vmem:[%s1482_s7 + $0x64] sm:$0xf] %v240_v25  ;;  %v244_v27 = vld [vmem:[%s1477_s6 + $0x144] sm:$0xf] }
  0x2a   : > { %243 = vst [vmem:[%s1482_s7 + $0x68] sm:$0xf] %v242_v26  ;;  %v246_v28 = vld [vmem:[%s1477_s6 + $0x150] sm:$0xf]  ;;  %v248_v29 = vld [vmem:[%s1477_s6 + $0x15c] sm:$0xf] }
  0x2b   : > { %245 = vst [vmem:[%s1482_s7 + $0x6c] sm:$0xf] %v244_v27  ;;  %247 = vst [vmem:[%s1482_s7 + $0x70] sm:$0xf] %v246_v28  ;;  %v250_v30 = vld [vmem:[%s1477_s6 + $0x168] sm:$0xf] }
  0x2c   : > { %249 = vst [vmem:[%s1482_s7 + $0x74] sm:$0xf] %v248_v29  ;;  %v252_v31 = vld [vmem:[%s1477_s6 + $0x174] sm:$0xf]  ;;  %251 = vst [vmem:[%s1482_s7 + $0x78] sm:$0xf] %v250_v30 }
  0x2d   : > { %253 = vst [vmem:[%s1482_s7 + $0x7c] sm:$0xf] %v252_v31 }
  0x2e PF: > { %p1135_p7 = scmp.ge.s32.totalorder %s1394_s18, 1  ;;  %p351_p8 = scmp.lt.s32.totalorder %s1394_s18, 7 }
  0x30   : > { %p352_p9 = pnand %p1135_p7, %p351_p8 }
  0x31   : > { %s358_s8 = sand.u32 (!%p352_p9), 1, %s1370_s12   ;;  %s1137_s9 = sshll.u32 (!%p352_p9), %s1378_s14, 4 }
  0x32   : > { %355 = sbr.rel (%p352_p9) target bundleno = 361 (0x169), region = 69  ;;  %s1136_s10 = sshll.u32 (!%p352_p9), %s358_s8, 7 }
  0x33   : > { %p397_p10 = scmp.lt.s32.totalorder (!%p352_p9), %s1137_s9, 47  ;;  %s1139_s11 = sshll.u32 (!%p352_p9), %s1382_s15, 5 }
  0x34   : > { %p409_p11 = scmp.lt.s32.totalorder (!%p352_p9), %s1139_s11, 63  ;;  %s1560_s12 = scalar_lea.vmem (!%p352_p9), [#allocation3], %s1136_s10 }
  0x35   : > { %p1141_p12 = scmp.ne.s32.totalorder (!%p352_p9), %s1378_s14, 0 }
  0x39   : > { %s1695_s9 = smov (!%p397_p10, %s1137_s9), 47  ;;  %s1697_s11 = smov (!%p409_p11, %s1139_s11), 63 }
  0x3a   : > { %s1138_s21 = sshll.u32 %s1695_s9, 2  ;;  %s1140_s26 = sshll.u32 %s1697_s11, 3  ;;  %v1396_v32 = vmov (!%p1141_p12), 0.0  }
  0x3b   : > { %s1553_s24 = scalar_lea.vmem %s1679_s1, %s1138_s21  ;;  %s1558_s29 = scalar_lea.vmem %s1681_s3, %s1140_s26  ;;  %422 = vst [vmem:[#allocation2] sm:$0xff] (!%p1141_p12), %v1396_v32  ;;  %423 = vst [vmem:[#allocation2 + $0x8] sm:$0xff] (!%p1141_p12), %v1396_v32 }
  0x3c   : > { %421 = sbr.rel (%p1141_p12) target bundleno = 75 (0x4b), region = 77  ;;  %424 = vst [vmem:[#allocation2 + $0x10] sm:$0xff] (!%p1141_p12), %v1396_v32  ;;  %425 = vst [vmem:[#allocation2 + $0x18] sm:$0xff] (!%p1141_p12), %v1396_v32 }
  0x3d   : > { %426 = vst [vmem:[#allocation2 + $0x20] sm:$0xff] (!%p1141_p12), %v1396_v32  ;;  %427 = vst [vmem:[#allocation2 + $0x28] sm:$0xff] (!%p1141_p12), %v1396_v32 }
  0x3e   : > { %428 = vst [vmem:[#allocation2 + $0x30] sm:$0xff] (!%p1141_p12), %v1396_v32  ;;  %429 = vst [vmem:[#allocation2 + $0x38] sm:$0xff] (!%p1141_p12), %v1396_v32 }
  0x3f   : > { %430 = vst [vmem:[#allocation2 + $0x40] sm:$0xff] (!%p1141_p12), %v1396_v32  ;;  %431 = vst [vmem:[#allocation2 + $0x48] sm:$0xff] (!%p1141_p12), %v1396_v32 }
  0x40   : > { %432 = vst [vmem:[#allocation2 + $0x50] sm:$0xff] (!%p1141_p12), %v1396_v32  ;;  %433 = vst [vmem:[#allocation2 + $0x58] sm:$0xff] (!%p1141_p12), %v1396_v32 }
  0x41   : > { %434 = vst [vmem:[#allocation2 + $0x60] sm:$0xff] (!%p1141_p12), %v1396_v32  ;;  %435 = vst [vmem:[#allocation2 + $0x68] sm:$0xff] (!%p1141_p12), %v1396_v32 }
  0x42   : > { %436 = vst [vmem:[#allocation2 + $0x70] sm:$0xff] (!%p1141_p12), %v1396_v32  ;;  %437 = vst [vmem:[#allocation2 + $0x78] sm:$0xff] (!%p1141_p12), %v1396_v32 }
  0x43   : > { %438 = vst [vmem:[#allocation2 + $0x80] sm:$0xff] %v1396_v32  ;;  %439 = vst [vmem:[#allocation2 + $0x88] sm:$0xff] %v1396_v32 }
  0x44   : > { %440 = vst [vmem:[#allocation2 + $0x90] sm:$0xff] %v1396_v32  ;;  %441 = vst [vmem:[#allocation2 + $0x98] sm:$0xff] %v1396_v32 }
  0x45   : > { %442 = vst [vmem:[#allocation2 + $0xa0] sm:$0xff] %v1396_v32  ;;  %443 = vst [vmem:[#allocation2 + $0xa8] sm:$0xff] %v1396_v32 }
  0x46   : > { %444 = vst [vmem:[#allocation2 + $0xb0] sm:$0xff] %v1396_v32  ;;  %445 = vst [vmem:[#allocation2 + $0xb8] sm:$0xff] %v1396_v32 }
  0x47   : > { %446 = vst [vmem:[#allocation2 + $0xc0] sm:$0xff] %v1396_v32  ;;  %447 = vst [vmem:[#allocation2 + $0xc8] sm:$0xff] %v1396_v32 }
  0x48   : > { %448 = vst [vmem:[#allocation2 + $0xd0] sm:$0xff] %v1396_v32  ;;  %449 = vst [vmem:[#allocation2 + $0xd8] sm:$0xff] %v1396_v32 }
  0x49   : > { %450 = vst [vmem:[#allocation2 + $0xe0] sm:$0xff] %v1396_v32  ;;  %451 = vst [vmem:[#allocation2 + $0xe8] sm:$0xff] %v1396_v32 }
  0x4a   : > { %452 = vst [vmem:[#allocation2 + $0xf0] sm:$0xff] %v1396_v32  ;;  %453 = vst [vmem:[#allocation2 + $0xf8] sm:$0xff] %v1396_v32 }
  0x4b PF: > { %v1316_v33 = vld [vmem:[%s1553_s24] sm:$0xff]   ;;  %v1317_v34 = vld [vmem:[%s1553_s24 + $0x8] sm:$0xff]   ;;  %v1318_v35 = vld [vmem:[%s1553_s24 + $0x10] sm:$0xff]   ;;  %p1166_p13 = scmp.ne.s32.totalorder %s1378_s14, 2 }
  0x4c   : > { %1194 = vmatprep.subr.bf16.mxu0 %v1316_v33  ;;  %1242 = vmatprep.subr.bf16.mxu1 %v1316_v33  ;;  %v1319_v36 = vld [vmem:[%s1553_s24 + $0x18] sm:$0xff]   ;;  %v1324_v37 = vld [vmem:[%s1560_s12] sm:$0xff]   ;;  %v1321_v40 = vld [vmem:[%s1553_s24 + $0x28] sm:$0xff]  }
  0x4d   : > { %1195 = vmatpush3.bf16.msra.mxu0 %v1316_v33  ;;  %1250 = vmatpush3.bf16.msra.mxu1 %v1316_v33  ;;  %v1325_v38 = vld [vmem:[%s1560_s12 + $0x40] sm:$0xff]   ;;  %v1322_v41 = vld [vmem:[%s1553_s24 + $0x30] sm:$0xff]   ;;  %v1323_v42 = vld [vmem:[%s1553_s24 + $0x38] sm:$0xff]  }
  0x4e   : > { %1196 = vmatprep.subr.bf16.mxu0 %v1317_v34  ;;  %1243 = vmatprep.subr.bf16.mxu1 %v1317_v34  ;;  %v1320_v39 = vld [vmem:[%s1553_s24 + $0x20] sm:$0xff]   ;;  %v1326_v43 = vld [vmem:[%s1560_s12 + $0x8] sm:$0xff]   ;;  %v1328_v45 = vld [vmem:[%s1560_s12 + $0x10] sm:$0xff]  }
  0x4f   : > { %1210 = vmatprep.mubr.bf16.mxu0 %v1324_v37  ;;  %1226 = vmatprep.mubr.bf16.mxu1 %v1325_v38  ;;  %v1327_v44 = vld [vmem:[%s1560_s12 + $0x48] sm:$0xff]   ;;  %v1329_v46 = vld [vmem:[%s1560_s12 + $0x50] sm:$0xff]   ;;  %v1330_v47 = vld [vmem:[%s1560_s12 + $0x18] sm:$0xff]  }
  0x50   : > { %v1331_v48 = vld [vmem:[%s1560_s12 + $0x58] sm:$0xff]   ;;  %v1332_v49 = vld [vmem:[%s1560_s12 + $0x20] sm:$0xff]   ;;  %v1334_v51 = vld [vmem:[%s1560_s12 + $0x28] sm:$0xff]  }
  0x51   : > { %1197 = vmatpush3.bf16.msra.mxu0 %v1317_v34  ;;  %1251 = vmatpush3.bf16.msra.mxu1 %v1317_v34  ;;  %v1333_v50 = vld [vmem:[%s1560_s12 + $0x60] sm:$0xff]   ;;  %v1335_v52 = vld [vmem:[%s1560_s12 + $0x68] sm:$0xff]   ;;  %v1336_v53 = vld [vmem:[%s1560_s12 + $0x30] sm:$0xff]  }
  0x52   : > { %1198 = vmatprep.subr.bf16.mxu0 %v1318_v35  ;;  %1244 = vmatprep.subr.bf16.mxu1 %v1318_v35  ;;  %v1337_v54 = vld [vmem:[%s1560_s12 + $0x70] sm:$0xff]   ;;  %v1338_v55 = vld [vmem:[%s1560_s12 + $0x38] sm:$0xff]   ;;  %v454_v59 = vld [vmem:[#allocation2] sm:$0xff] }
  0x53   : > { %v1339_v56 = vld [vmem:[%s1560_s12 + $0x78] sm:$0xff]   ;;  %v456_v57 = vld [vmem:[#allocation2 + $0x10] sm:$0xff]  ;;  %v470_v60 = vld [vmem:[#allocation2 + $0x80] sm:$0xff] }
  0x54   : > { %v472_v58 = vld [vmem:[#allocation2 + $0x90] sm:$0xff]  ;;  %v457_v63 = vld [vmem:[#allocation2 + $0x18] sm:$0xff]  ;;  %v455_v5 = vld [vmem:[#allocation2 + $0x8] sm:$0xff] }
  0x55   : > { %1199 = vmatpush3.bf16.msra.mxu0 %v1318_v35  ;;  %1252 = vmatpush3.bf16.msra.mxu1 %v1318_v35  ;;  %v473_v0 = vld [vmem:[#allocation2 + $0x98] sm:$0xff]  ;;  %v471_v6 = vld [vmem:[#allocation2 + $0x88] sm:$0xff]  ;;  %v460_v17 = vld [vmem:[#allocation2 + $0x30] sm:$0xff] }
  0x56   : > { %1200 = vmatprep.subr.bf16.mxu0 %v1319_v36  ;;  %1245 = vmatprep.subr.bf16.mxu1 %v1319_v36  ;;  %v476_v18 = vld [vmem:[#allocation2 + $0xb0] sm:$0xff]  ;;  %v458_v19 = vld [vmem:[#allocation2 + $0x20] sm:$0xff]  ;;  %v461_v23 = vld [vmem:[#allocation2 + $0x38] sm:$0xff] }
  0x57   : > { %v474_v20 = vld [vmem:[#allocation2 + $0xa0] sm:$0xff]  ;;  %v477_v24 = vld [vmem:[#allocation2 + $0xb8] sm:$0xff]  ;;  %v459_v29 = vld [vmem:[#allocation2 + $0x28] sm:$0xff] }
  0x58   : > { %v475_v30 = vld [vmem:[#allocation2 + $0xa8] sm:$0xff] }
  0x59   : > { %1201 = vmatpush3.bf16.msra.mxu0 %v1319_v36  ;;  %1253 = vmatpush3.bf16.msra.mxu1 %v1319_v36 }
  0x5a   : > { %1202 = vmatprep.subr.bf16.mxu0 %v1320_v39  ;;  %1246 = vmatprep.subr.bf16.mxu1 %v1320_v39 }
  0x5d   : > { %1203 = vmatpush3.bf16.msra.mxu0 %v1320_v39  ;;  %1254 = vmatpush3.bf16.msra.mxu1 %v1320_v39 }
  0x5e   : > { %1204 = vmatprep.subr.bf16.mxu0 %v1321_v40  ;;  %1247 = vmatprep.subr.bf16.mxu1 %v1321_v40 }
  0x61   : > { %1205 = vmatpush3.bf16.msra.mxu0 %v1321_v40  ;;  %1255 = vmatpush3.bf16.msra.mxu1 %v1321_v40 }
  0x62   : > { %1206 = vmatprep.subr.bf16.mxu0 %v1322_v41  ;;  %1248 = vmatprep.subr.bf16.mxu1 %v1322_v41 }
  0x65   : > { %1207 = vmatpush3.bf16.msra.mxu0 %v1322_v41  ;;  %1256 = vmatpush3.bf16.msra.mxu1 %v1322_v41  ;;  %v464_v41 = vld [vmem:[#allocation2 + $0x50] sm:$0xff] }
  0x66   : > { %1208 = vmatprep.subr.bf16.mxu0 %v1323_v42  ;;  %1249 = vmatprep.subr.bf16.mxu1 %v1323_v42 }
  0x69   : > { %1209 = vmatpush3.bf16.msra.mxu0 %v1323_v42  ;;  %1257 = vmatpush3.bf16.msra.mxu1 %v1323_v42  ;;  %v480_v42 = vld [vmem:[#allocation2 + $0xd0] sm:$0xff] }
  0x6c   : > { %1211 = vmatmul.mubr.bf16.vlgmr.msra.gmra.mrb[0].mxu0 %v1326_v43  ;;  %1227 = vmatmul.mubr.bf16.vlgmr.msra.gmra.mrb[0].mxu1 %v1327_v44  ;;  %v462_v43 = vld [vmem:[#allocation2 + $0x40] sm:$0xff] }
  0x6d   : > { %1214 = vmatprep.mubr.bf16.mxu0 %v1328_v45  ;;  %1230 = vmatprep.mubr.bf16.mxu1 %v1329_v46  ;;  %v478_v44 = vld [vmem:[#allocation2 + $0xc0] sm:$0xff] }
  0x74   : > { %1215 = vmatmul.mubr.bf16.gmra.mrb[4].mxu0 %v1330_v47  ;;  %1231 = vmatmul.mubr.bf16.gmra.mrb[4].mxu1 %v1331_v48  ;;  %v465_v47 = vld [vmem:[#allocation2 + $0x58] sm:$0xff] }
  0x75   : > { %1218 = vmatprep.mubr.bf16.mxu0 %v1332_v49  ;;  %1234 = vmatprep.mubr.bf16.mxu1 %v1333_v50  ;;  %v481_v48 = vld [vmem:[#allocation2 + $0xd8] sm:$0xff] }
  0x7c   : > { %1219 = vmatmul.mubr.bf16.gmra.mrb[8].mxu0 %v1334_v51  ;;  %1235 = vmatmul.mubr.bf16.gmra.mrb[8].mxu1 %v1335_v52 }
  0x7d   : > { %1222 = vmatprep.mubr.bf16.mxu0 %v1336_v53  ;;  %1238 = vmatprep.mubr.bf16.mxu1 %v1337_v54  ;;  %v463_v53 = vld [vmem:[#allocation2 + $0x48] sm:$0xff] }
  0x7e   : > { %v479_v54 = vld [vmem:[#allocation2 + $0xc8] sm:$0xff] }
  0x84   : > { %1223 = vmatmul.mubr.bf16.gmra.mrb[12].mxu0 %v1338_v55  ;;  %1239 = vmatmul.mubr.bf16.gmra.mrb[12].mxu1 %v1339_v56 }
 0x13f   : > { %v1212_v61 = vpop.f32.mrb[0].mxu0  ;;  %v1228_v62 = vpop.f32.mrb[0].mxu1 }
 0x140   : > { %v841_v1 = vadd.f32 %v1212_v61, %v456_v57  ;;  %v857_v2 = vadd.f32 %v1228_v62, %v472_v58  ;;  %v712_v3 = vpop.f32.mrb[1].mxu0  ;;  %v776_v4 = vpop.f32.mrb[1].mxu1 }
 0x141   : > { %v839_v7 = vadd.f32 %v712_v3, %v454_v59  ;;  %v855_v8 = vadd.f32 %v776_v4, %v470_v60  ;;  %v1213_v9 = vpop.f32.mrb[2].mxu0  ;;  %v1229_v10 = vpop.f32.mrb[2].mxu1  ;;  %v466_v3 = vld [vmem:[#allocation2 + $0x60] sm:$0xff] }
 0x142   : > { %873 = vst [vmem:[#allocation2 + $0x10] sm:$0xff] %v841_v1  ;;  %889 = vst [vmem:[#allocation2 + $0x90] sm:$0xff] %v857_v2  ;;  %v842_v11 = vadd.f32 %v1213_v9, %v457_v63  ;;  %v858_v12 = vadd.f32 %v1229_v10, %v473_v0  ;;  %v715_v13 = vpop.f32.mrb[3].mxu0  ;;  %v779_v14 = vpop.f32.mrb[3].mxu1  ;;  %v468_v1 = vld [vmem:[#allocation2 + $0x70] sm:$0xff]  ;;  %v482_v4 = vld [vmem:[#allocation2 + $0xe0] sm:$0xff] }
 0x143   : > { %871 = vst [vmem:[#allocation2] sm:$0xff] %v839_v7  ;;  %887 = vst [vmem:[#allocation2 + $0x80] sm:$0xff] %v855_v8  ;;  %v840_v15 = vadd.f32 %v715_v13, %v455_v5  ;;  %v856_v16 = vadd.f32 %v779_v14, %v471_v6  ;;  %v484_v2 = vld [vmem:[#allocation2 + $0xf0] sm:$0xff]  ;;  %v469_v7 = vld [vmem:[#allocation2 + $0x78] sm:$0xff] }
 0x144   : > { %874 = vst [vmem:[#allocation2 + $0x18] sm:$0xff] %v842_v11  ;;  %890 = vst [vmem:[#allocation2 + $0x98] sm:$0xff] %v858_v12  ;;  %v485_v8 = vld [vmem:[#allocation2 + $0xf8] sm:$0xff]  ;;  %v467_v13 = vld [vmem:[#allocation2 + $0x68] sm:$0xff] }
 0x145   : > { %872 = vst [vmem:[#allocation2 + $0x8] sm:$0xff] %v840_v15  ;;  %888 = vst [vmem:[#allocation2 + $0x88] sm:$0xff] %v856_v16  ;;  %v483_v14 = vld [vmem:[#allocation2 + $0xe8] sm:$0xff] }
 0x147   : > { %v1216_v21 = vpop.f32.mrb[4].mxu0  ;;  %v1232_v22 = vpop.f32.mrb[4].mxu1 }
 0x148   : > { %v845_v25 = vadd.f32 %v1216_v21, %v460_v17  ;;  %v861_v26 = vadd.f32 %v1232_v22, %v476_v18  ;;  %v728_v27 = vpop.f32.mrb[5].mxu0  ;;  %v792_v28 = vpop.f32.mrb[5].mxu1 }
 0x149   : > { %v843_v31 = vadd.f32 %v728_v27, %v458_v19  ;;  %v859_v32 = vadd.f32 %v792_v28, %v474_v20  ;;  %v1217_v33 = vpop.f32.mrb[6].mxu0  ;;  %v1233_v34 = vpop.f32.mrb[6].mxu1 }
 0x14a   : > { %877 = vst [vmem:[#allocation2 + $0x30] sm:$0xff] %v845_v25  ;;  %893 = vst [vmem:[#allocation2 + $0xb0] sm:$0xff] %v861_v26  ;;  %v846_v35 = vadd.f32 %v1217_v33, %v461_v23  ;;  %v862_v36 = vadd.f32 %v1233_v34, %v477_v24  ;;  %v731_v37 = vpop.f32.mrb[7].mxu0  ;;  %v795_v38 = vpop.f32.mrb[7].mxu1  ;;  %v907_v25 = vld [vmem:[#allocation2] sm:$0xff] (!%p1166_p13) }
 0x14b   : > { %875 = vst [vmem:[#allocation2 + $0x20] sm:$0xff] %v843_v31  ;;  %891 = vst [vmem:[#allocation2 + $0xa0] sm:$0xff] %v859_v32  ;;  %v844_v39 = vadd.f32 %v731_v37, %v459_v29  ;;  %v860_v40 = vadd.f32 %v795_v38, %v475_v30  ;;  %v1591_v26 = vld [vmem:[%s1680_s2] ss:$0 sm:$0xff] (!%p1166_p13)  ;;  %v909_v30 = vld [vmem:[#allocation2 + $0x10] sm:$0xff] (!%p1166_p13) }
 0x14c   : > { %878 = vst [vmem:[#allocation2 + $0x38] sm:$0xff] %v846_v35  ;;  %894 = vst [vmem:[#allocation2 + $0xb8] sm:$0xff] %v862_v36  ;;  %v908_v27 = vld [vmem:[#allocation2 + $0x8] sm:$0xff] (!%p1166_p13)  ;;  %v946_v28 = vadd.f32 (!%p1166_p13), %v1591_v26, %v907_v25  ;;  %v910_v31 = vld [vmem:[#allocation2 + $0x18] sm:$0xff] (!%p1166_p13)  ;;  %v948_v33 = vadd.f32 (!%p1166_p13), %v1591_v26, %v909_v30 }
 0x14d   : > { %876 = vst [vmem:[#allocation2 + $0x28] sm:$0xff] %v844_v39  ;;  %892 = vst [vmem:[#allocation2 + $0xa8] sm:$0xff] %v860_v40  ;;  %v947_v29 = vadd.f32 (!%p1166_p13), %v1591_v26, %v908_v27  ;;  %v949_v34 = vadd.f32 (!%p1166_p13), %v1591_v26, %v910_v31 }
 0x14e   : > { %978 = vst [vmem:[%s1558_s29] sm:$0xff] (!%p1166_p13), %v946_v28  ;;  %980 = vst [vmem:[%s1558_s29 + $0x10] sm:$0xff] (!%p1166_p13), %v948_v33 }
 0x14f   : > { %v1220_v45 = vpop.f32.mrb[8].mxu0  ;;  %v1236_v46 = vpop.f32.mrb[8].mxu1  ;;  %979 = vst [vmem:[%s1558_s29 + $0x8] sm:$0xff] (!%p1166_p13), %v947_v29  ;;  %981 = vst [vmem:[%s1558_s29 + $0x18] sm:$0xff] (!%p1166_p13), %v949_v34 }
 0x150   : > { %v849_v49 = vadd.f32 %v1220_v45, %v464_v41  ;;  %v865_v50 = vadd.f32 %v1236_v46, %v480_v42  ;;  %v744_v51 = vpop.f32.mrb[9].mxu0  ;;  %v808_v52 = vpop.f32.mrb[9].mxu1 }
 0x151   : > { %v847_v55 = vadd.f32 %v744_v51, %v462_v43  ;;  %v863_v56 = vadd.f32 %v808_v52, %v478_v44  ;;  %v1221_v57 = vpop.f32.mrb[10].mxu0  ;;  %v1237_v58 = vpop.f32.mrb[10].mxu1  ;;  %v913_v37 = vld [vmem:[#allocation2 + $0x30] sm:$0xff] (!%p1166_p13) }
 0x152   : > { %881 = vst [vmem:[#allocation2 + $0x50] sm:$0xff] %v849_v49  ;;  %897 = vst [vmem:[#allocation2 + $0xd0] sm:$0xff] %v865_v50  ;;  %v850_v59 = vadd.f32 %v1221_v57, %v465_v47  ;;  %v866_v60 = vadd.f32 %v1237_v58, %v481_v48  ;;  %v747_v61 = vpop.f32.mrb[11].mxu0  ;;  %v811_v62 = vpop.f32.mrb[11].mxu1  ;;  %v911_v32 = vld [vmem:[#allocation2 + $0x20] sm:$0xff] (!%p1166_p13)  ;;  %v952_v40 = vadd.f32 (!%p1166_p13), %v1591_v26, %v913_v37 }
 0x153   : > { %879 = vst [vmem:[#allocation2 + $0x40] sm:$0xff] %v847_v55  ;;  %895 = vst [vmem:[#allocation2 + $0xc0] sm:$0xff] %v863_v56  ;;  %v848_v63 = vadd.f32 %v747_v61, %v463_v53  ;;  %v864_v0 = vadd.f32 %v811_v62, %v479_v54  ;;  %v950_v35 = vadd.f32 (!%p1166_p13), %v1591_v26, %v911_v32  ;;  %v914_v38 = vld [vmem:[#allocation2 + $0x38] sm:$0xff] (!%p1166_p13)  ;;  %v923_v56 = vld [vmem:[#allocation2 + $0x80] sm:$0xff] (!%p1166_p13) }
 0x154   : > { %882 = vst [vmem:[#allocation2 + $0x58] sm:$0xff] %v850_v59  ;;  %898 = vst [vmem:[#allocation2 + $0xd8] sm:$0xff] %v866_v60  ;;  %v912_v36 = vld [vmem:[#allocation2 + $0x28] sm:$0xff] (!%p1166_p13)  ;;  %v953_v41 = vadd.f32 (!%p1166_p13), %v1591_v26, %v914_v38  ;;  %v962_v59 = vadd.f32 (!%p1166_p13), %v1591_v26, %v923_v56  ;;  %v925_v61 = vld [vmem:[#allocation2 + $0x90] sm:$0xff] (!%p1166_p13) }
 0x155   : > { %880 = vst [vmem:[#allocation2 + $0x48] sm:$0xff] %v848_v63  ;;  %896 = vst [vmem:[#allocation2 + $0xc8] sm:$0xff] %v864_v0  ;;  %v951_v39 = vadd.f32 (!%p1166_p13), %v1591_v26, %v912_v36  ;;  %v924_v60 = vld [vmem:[#allocation2 + $0x88] sm:$0xff] (!%p1166_p13)  ;;  %v926_v62 = vld [vmem:[#allocation2 + $0x98] sm:$0xff] (!%p1166_p13)  ;;  %v964_v0 = vadd.f32 (!%p1166_p13), %v1591_v26, %v925_v61 }
 0x156   : > { %982 = vst [vmem:[%s1558_s29 + $0x20] sm:$0xff] (!%p1166_p13), %v950_v35  ;;  %984 = vst [vmem:[%s1558_s29 + $0x30] sm:$0xff] (!%p1166_p13), %v952_v40  ;;  %v963_v63 = vadd.f32 (!%p1166_p13), %v1591_v26, %v924_v60 }
 0x157   : > { %v1224_v5 = vpop.f32.mrb[12].mxu0  ;;  %v1240_v6 = vpop.f32.mrb[12].mxu1  ;;  %906 = sbr.rel (%p1166_p13) target bundleno = 361 (0x169), region = 81  ;;  %983 = vst [vmem:[%s1558_s29 + $0x28] sm:$0xff] (!%p1166_p13), %v951_v39  ;;  %985 = vst [vmem:[%s1558_s29 + $0x38] sm:$0xff] (!%p1166_p13), %v953_v41 }
 0x158   : > { %v853_v9 = vadd.f32 %v1224_v5, %v468_v1  ;;  %v869_v10 = vadd.f32 %v1240_v6, %v484_v2  ;;  %v760_v11 = vpop.f32.mrb[13].mxu0  ;;  %v824_v12 = vpop.f32.mrb[13].mxu1  ;;  %v965_v1 = vadd.f32 (!%p1166_p13), %v1591_v26, %v926_v62  ;;  %v927_v2 = vld [vmem:[#allocation2 + $0xa0] sm:$0xff] (!%p1166_p13)  ;;  %994 = vst [vmem:[%s1558_s29 + $0x80] sm:$0xff] (!%p1166_p13), %v962_v59  ;;  %995 = vst [vmem:[%s1558_s29 + $0x88] sm:$0xff] (!%p1166_p13), %v963_v63 }
 0x159   : > { %v851_v15 = vadd.f32 %v760_v11, %v466_v3  ;;  %v867_v16 = vadd.f32 %v824_v12, %v482_v4  ;;  %v1225_v17 = vpop.f32.mrb[14].mxu0  ;;  %v1241_v18 = vpop.f32.mrb[14].mxu1  ;;  %v917_v44 = vld [vmem:[#allocation2 + $0x50] sm:$0xff] (!%p1166_p13)  ;;  %v928_v3 = vld [vmem:[#allocation2 + $0xa8] sm:$0xff] (!%p1166_p13)  ;;  %v966_v5 = vadd.f32 (!%p1166_p13), %v1591_v26, %v927_v2  ;;  %996 = vst [vmem:[%s1558_s29 + $0x90] sm:$0xff] (!%p1166_p13), %v964_v0 }
 0x15a   : > { %885 = vst [vmem:[#allocation2 + $0x70] sm:$0xff] %v853_v9  ;;  %901 = vst [vmem:[#allocation2 + $0xf0] sm:$0xff] %v869_v10  ;;  %v854_v19 = vadd.f32 %v1225_v17, %v469_v7  ;;  %v870_v20 = vadd.f32 %v1241_v18, %v485_v8  ;;  %v763_v21 = vpop.f32.mrb[15].mxu0  ;;  %v827_v22 = vpop.f32.mrb[15].mxu1  ;;  %v915_v42 = vld [vmem:[#allocation2 + $0x40] sm:$0xff] (!%p1166_p13)  ;;  %v956_v47 = vadd.f32 (!%p1166_p13), %v1591_v26, %v917_v44  ;;  %v929_v4 = vld [vmem:[#allocation2 + $0xb0] sm:$0xff] (!%p1166_p13) }
 0x15b   : > { %883 = vst [vmem:[#allocation2 + $0x60] sm:$0xff] %v851_v15  ;;  %899 = vst [vmem:[#allocation2 + $0xe0] sm:$0xff] %v867_v16  ;;  %v852_v23 = vadd.f32 %v763_v21, %v467_v13  ;;  %v868_v24 = vadd.f32 %v827_v22, %v483_v14  ;;  %v954_v45 = vadd.f32 (!%p1166_p13), %v1591_v26, %v915_v42  ;;  %v918_v48 = vld [vmem:[#allocation2 + $0x58] sm:$0xff] (!%p1166_p13)  ;;  %v931_v9 = vld [vmem:[#allocation2 + $0xc0] sm:$0xff] (!%p1166_p13) }
 0x15c   : > { %886 = vst [vmem:[#allocation2 + $0x78] sm:$0xff] %v854_v19  ;;  %902 = vst [vmem:[#allocation2 + $0xf8] sm:$0xff] %v870_v20  ;;  %v916_v43 = vld [vmem:[#allocation2 + $0x48] sm:$0xff] (!%p1166_p13)  ;;  %v957_v51 = vadd.f32 (!%p1166_p13), %v1591_v26, %v918_v48  ;;  %v967_v6 = vadd.f32 (!%p1166_p13), %v1591_v26, %v928_v3  ;;  %v968_v7 = vadd.f32 (!%p1166_p13), %v1591_v26, %v929_v4  ;;  %v930_v8 = vld [vmem:[#allocation2 + $0xb8] sm:$0xff] (!%p1166_p13) }
 0x15d   : > { %884 = vst [vmem:[#allocation2 + $0x68] sm:$0xff] %v852_v23  ;;  %900 = vst [vmem:[#allocation2 + $0xe8] sm:$0xff] %v868_v24  ;;  %v955_v46 = vadd.f32 (!%p1166_p13), %v1591_v26, %v916_v43  ;;  %v932_v10 = vld [vmem:[#allocation2 + $0xc8] sm:$0xff] (!%p1166_p13)  ;;  %v969_v11 = vadd.f32 (!%p1166_p13), %v1591_v26, %v930_v8  ;;  %v970_v12 = vadd.f32 (!%p1166_p13), %v1591_v26, %v931_v9  ;;  %v933_v14 = vld [vmem:[#allocation2 + $0xd0] sm:$0xff] (!%p1166_p13) }
 0x15e   : > { %986 = vst [vmem:[%s1558_s29 + $0x40] sm:$0xff] %v954_v45  ;;  %988 = vst [vmem:[%s1558_s29 + $0x50] sm:$0xff] %v956_v47  ;;  %v971_v13 = vadd.f32 %v1591_v26, %v932_v10  ;;  %v934_v15 = vld [vmem:[#allocation2 + $0xd8] sm:$0xff]  ;;  %v972_v17 = vadd.f32 %v1591_v26, %v933_v14 }
 0x15f   : > { %987 = vst [vmem:[%s1558_s29 + $0x48] sm:$0xff] %v955_v46  ;;  %989 = vst [vmem:[%s1558_s29 + $0x58] sm:$0xff] %v957_v51  ;;  %v973_v18 = vadd.f32 %v1591_v26, %v934_v15 }
 0x160   : > { %997 = vst [vmem:[%s1558_s29 + $0x98] sm:$0xff] %v965_v1  ;;  %998 = vst [vmem:[%s1558_s29 + $0xa0] sm:$0xff] %v966_v5 }
 0x161   : > { %v921_v54 = vld [vmem:[#allocation2 + $0x70] sm:$0xff]  ;;  %999 = vst [vmem:[%s1558_s29 + $0xa8] sm:$0xff] %v967_v6  ;;  %1000 = vst [vmem:[%s1558_s29 + $0xb0] sm:$0xff] %v968_v7 }
 0x162   : > { %v919_v49 = vld [vmem:[#allocation2 + $0x60] sm:$0xff]  ;;  %v960_v57 = vadd.f32 %v1591_v26, %v921_v54  ;;  %v937_v21 = vld [vmem:[#allocation2 + $0xf0] sm:$0xff]  ;;  %1001 = vst [vmem:[%s1558_s29 + $0xb8] sm:$0xff] %v969_v11  ;;  %1002 = vst [vmem:[%s1558_s29 + $0xc0] sm:$0xff] %v970_v12 }
 0x163   : > { %v958_v52 = vadd.f32 %v1591_v26, %v919_v49  ;;  %v922_v55 = vld [vmem:[#allocation2 + $0x78] sm:$0xff]  ;;  %v935_v16 = vld [vmem:[#allocation2 + $0xe0] sm:$0xff]  ;;  %1003 = vst [vmem:[%s1558_s29 + $0xc8] sm:$0xff] %v971_v13  ;;  %v976_v24 = vadd.f32 %v1591_v26, %v937_v21  ;;  %1004 = vst [vmem:[%s1558_s29 + $0xd0] sm:$0xff] %v972_v17 }
 0x164   : > { %v920_v50 = vld [vmem:[#allocation2 + $0x68] sm:$0xff]  ;;  %v961_v58 = vadd.f32 %v1591_v26, %v922_v55  ;;  %992 = vst [vmem:[%s1558_s29 + $0x70] sm:$0xff] %v960_v57  ;;  %v974_v19 = vadd.f32 %v1591_v26, %v935_v16  ;;  %v938_v22 = vld [vmem:[#allocation2 + $0xf8] sm:$0xff]  ;;  %1005 = vst [vmem:[%s1558_s29 + $0xd8] sm:$0xff] %v973_v18 }
 0x165   : > { %v959_v53 = vadd.f32 %v1591_v26, %v920_v50  ;;  %990 = vst [vmem:[%s1558_s29 + $0x60] sm:$0xff] %v958_v52  ;;  %v936_v20 = vld [vmem:[#allocation2 + $0xe8] sm:$0xff]  ;;  %v977_v25 = vadd.f32 %v1591_v26, %v938_v22  ;;  %1008 = vst [vmem:[%s1558_s29 + $0xf0] sm:$0xff] %v976_v24 }
 0x166   : > { %993 = vst [vmem:[%s1558_s29 + $0x78] sm:$0xff] %v961_v58  ;;  %v975_v23 = vadd.f32 %v1591_v26, %v936_v20  ;;  %1006 = vst [vmem:[%s1558_s29 + $0xe0] sm:$0xff] %v974_v19 }
 0x167   : > { %991 = vst [vmem:[%s1558_s29 + $0x68] sm:$0xff] %v959_v53  ;;  %1009 = vst [vmem:[%s1558_s29 + $0xf8] sm:$0xff] %v977_v25 }
 0x168   : > { %1007 = vst [vmem:[%s1558_s29 + $0xe8] sm:$0xff] %v975_v23 }
 0x169 PF: > { %s13_s18 = sadd.s32 1, %s1394_s18   ;;  %s1682_s12 = smov %s1374_s13 }
 0x16a   : > { %p10_p0 = scmp.ge.s32.totalorder %s13_s18, 8   ;;  %s1683_s13 = smov %s1468_s25 }
 0x16b   : > { %s1684_s14 = smov %s1386_s16  ;;  %s1685_s15 = smov %s1390_s17 }
 0x16c   : > { %s1686_s16 = smov %s1689_s19  ;;  %s1687_s17 = smov %s1693_s20 }
 0x16d   :  { %12 = sbr.rel (!%p10_p0) target bundleno = 4 (0x4), region = 122 }

// kernel: se_basic_block_forward.5
= control target key start
LH: loop header
LB: loop body
LE: loop exit
PB: predicated region body
PF: predicated region fallthrough
CT: control target
= control target key end

     0   :  { %9 = vsyncpa [#allocation3], 0  ;;  %s1552_s0 = inlined_call_operand.vmem [shape: f32[2,256,128], index: 0, kind: input, shape index: {}]   ;;  %s1553_s1 = inlined_call_operand.vmem [shape: f32[2,256,128], index: 1, kind: input, shape index: {}]   ;;  %s1554_s2 = inlined_call_operand.vmem [shape: f32[128,128], index: 2, kind: input, shape index: {}]   ;;  %s1555_s3 = inlined_call_operand.vmem [shape: f32[128,128], index: 3, kind: input, shape index: {}]   ;;  %s1556_s4 = inlined_call_operand.hbm [shape: f32[2,256,128], index: 4, kind: output, shape index: {}]  }
   0x1   :  { %11 = vsyncpa [#allocation3 + $0x1], 0  ;;  %s1029_s15 = smov 0   ;;  %s1031_s16 = smov 0  }
   0x2   :  { %s1033_s17 = smov 0   ;;  %s1035_s18 = smov 0  }
   0x3 LB: > { %s1050_s19 = sadd.s32 4294967295, %s996_s18   ;;  %s717_s20 = sadd.s32 4294967294, %s996_s18   ;;  %s996_s18 = sphi %s1035_s18, %s1562_s18   ;;  %s992_s17 = sphi %s1033_s17, %s1561_s17   ;;  %s988_s16 = sphi %s1031_s16, %s1560_s16   ;;  %s984_s15 = sphi %s1029_s15, %s1559_s15  }
   0x4   : > { %s1054_s21 = sadd.s32 1, %s996_s18   ;;  %s118_s22 = sadd.s32 1, %s992_s17 }
   0x5   : > { %s115_s23 = ssub.s32 %s996_s18, %s1054_s21  ;;  %p128_p0 = scmp.ne.s32.totalorder %s992_s17, %s988_s16 }
   0x6   : > { %p116_p1 = scmp.eq.s32.totalorder %s115_s23, 0  ;;  %p129_p2 = scmp.eq.s32.totalorder %s1050_s19, 1 }
   0x7   : > { %p134_p3 = scmp.ne.s32.totalorder %s988_s16, %s984_s15  ;;  %p135_p4 = scmp.eq.s32.totalorder %s717_s20, 1 }
   0x8   : > { %s1065_s24 = scalar_select %p116_p1, %s992_s17, %s118_s22  }
   0x9   : > { %p1067_p5 = por %p129_p2, %p128_p0  ;;  %p1071_p6 = por %p135_p4, %p134_p3 }
   0xa   : > { %p720_p7 = scmp.ge.s32.totalorder %s996_s18, 1  ;;  %p175_p8 = scmp.lt.s32.totalorder %s996_s18, 3 }
   0xc   : > { %p176_p9 = pnand %p720_p7, %p175_p8 }
   0xd   : > { %v286_v0 = vld [vmem:[%s1554_s2] sm:$0xff] (!%p176_p9)  ;;  %v287_v1 = vld [vmem:[%s1554_s2 + $0x8] sm:$0xff] (!%p176_p9)  ;;  %v288_v2 = vld [vmem:[%s1554_s2 + $0x10] sm:$0xff] (!%p176_p9)  ;;  %v998_v3 = vmov (!%p176_p9), 0.0|0.0   ;;  %vm999_vm0 = vmmov (!%p176_p9), 0   ;;  %v1000_v6 = vmov (!%p176_p9), 0.0  }
   0xe   : > { %179 = sbr.rel (%p176_p9) target bundleno = 606 (0x25e), region = 36  ;;  %838 = vmatprep.subr.bf16.mxu0 (!%p176_p9), %v998_v3  ;;  %v839_v4 = vpack.c.bf16 (!%p176_p9), %v287_v1, %v286_v0  ;;  %v289_v5 = vld [vmem:[%s1554_s2 + $0x18] sm:$0xff] (!%p176_p9)  ;;  %800 = vmatprep.mubr.msk.f32.mxu0 (!%p176_p9), %vm999_vm0, %v1000_v6  ;;  %p206_p10 = scmp.lt.s32.totalorder (!%p176_p9), %s1050_s19, 1  ;;  %v290_v8 = vld [vmem:[%s1554_s2 + $0x20] sm:$0xff] (!%p176_p9)  ;;  %v291_v9 = vld [vmem:[%s1554_s2 + $0x28] sm:$0xff] (!%p176_p9) }
   0xf   : > { %862 = vmatprep.subr.bf16.mxu1 (!%p176_p9), %v998_v3  ;;  %835 = vmatprep.mubr.msk.f32.mxu1 (!%p176_p9), %vm999_vm0, %v1000_v6  ;;  %v842_v7 = vpack.c.bf16 (!%p176_p9), %v289_v5, %v288_v2  ;;  %v373_v10 = vld [vmem:[%s1555_s3] sm:$0xff] (!%p176_p9)  ;;  %v374_v11 = vld [vmem:[%s1555_s3 + $0x8] sm:$0xff] (!%p176_p9)  ;;  %v375_v13 = vld [vmem:[%s1555_s3 + $0x10] sm:$0xff] (!%p176_p9)  ;;  %v845_v15 = vpack.c.bf16 (!%p176_p9), %v291_v9, %v290_v8  ;;  %s733_s20 = sshll.u32 (!%p176_p9), %s1050_s19, 12  ;;  %s1001_s5 = smov (!%p176_p9), [#allocation2]  }
  0x10   : > { %840 = vmatpush3.bf16.msra.mxu0 (!%p176_p9), %v839_v4  ;;  %v863_v12 = vpack.c.bf16 (!%p176_p9), %v374_v11, %v373_v10  ;;  %v376_v14 = vld [vmem:[%s1555_s3 + $0x18] sm:$0xff] (!%p176_p9)  ;;  %v292_v16 = vld [vmem:[%s1554_s2 + $0x30] sm:$0xff] (!%p176_p9)  ;;  %v377_v23 = vld [vmem:[%s1555_s3 + $0x20] sm:$0xff] (!%p176_p9)  ;;  %s1489_s28 = scalar_lea.hbm (!%p176_p9), %s1556_s4, %s733_s20  ;;  %s938_s6 = sshll.u32 (!%p176_p9), %s1001_s5, 4  ;;  %s939_s6 = int_to_ptr.vmem [resolvable:$false] %s938_s6 }
  0x11   : > { %841 = vmatprep.subr.bf16.mxu0 (!%p176_p9), %v998_v3  ;;  %v293_v17 = vld [vmem:[%s1554_s2 + $0x38] sm:$0xff] (!%p176_p9)  ;;  %v866_v21 = vpack.c.bf16 (!%p176_p9), %v376_v14, %v375_v13  ;;  %v378_v24 = vld [vmem:[%s1555_s3 + $0x28] sm:$0xff] (!%p176_p9)  ;;  %v294_v28 = vld [vmem:[%s1554_s2 + $0x40] sm:$0xff] (!%p176_p9)  ;;  %s940_s7 = scalar_lea.vmem (!%p176_p9), %s939_s6, 8192 }
  0x12   : > { %864 = vmatpush3.bf16.msra.mxu1 (!%p176_p9), %v863_v12  ;;  %v848_v26 = vpack.c.bf16 (!%p176_p9), %v293_v17, %v292_v16  ;;  %v295_v29 = vld [vmem:[%s1554_s2 + $0x48] sm:$0xff] (!%p176_p9)  ;;  %v869_v31 = vpack.c.bf16 (!%p176_p9), %v378_v24, %v377_v23  ;;  %v379_v33 = vld [vmem:[%s1555_s3 + $0x30] sm:$0xff] (!%p176_p9)  ;;  %v380_v34 = vld [vmem:[%s1555_s3 + $0x38] sm:$0xff] (!%p176_p9) }
  0x13   : > { %865 = vmatprep.subr.bf16.mxu1 (!%p176_p9), %v998_v3  ;;  %v851_v36 = vpack.c.bf16 (!%p176_p9), %v295_v29, %v294_v28  ;;  %v296_v38 = vld [vmem:[%s1554_s2 + $0x50] sm:$0xff] (!%p176_p9)  ;;  %v297_v39 = vld [vmem:[%s1554_s2 + $0x58] sm:$0xff] (!%p176_p9)  ;;  %v872_v41 = vpack.c.bf16 (!%p176_p9), %v380_v34, %v379_v33  ;;  %v298_v46 = vld [vmem:[%s1554_s2 + $0x60] sm:$0xff] (!%p176_p9) }
  0x14   : > { %843 = vmatpush3.bf16.msra.mxu0 (!%p176_p9), %v842_v7  ;;  %v854_v44 = vpack.c.bf16 (!%p176_p9), %v297_v39, %v296_v38  ;;  %v299_v47 = vld [vmem:[%s1554_s2 + $0x68] sm:$0xff] (!%p176_p9)  ;;  %v300_v53 = vld [vmem:[%s1554_s2 + $0x70] sm:$0xff] (!%p176_p9)  ;;  %v301_v54 = vld [vmem:[%s1554_s2 + $0x78] sm:$0xff] (!%p176_p9) }
  0x15   : > { %s1100_s13 = scalar_select %p206_p10, %s1050_s19, 1  ;;  %844 = vmatprep.subr.bf16.mxu0 %v998_v3  ;;  %v857_v51 = vpack.c.bf16 %v299_v47, %v298_v46  ;;  %v860_v58 = vpack.c.bf16 %v301_v54, %v300_v53  ;;  %v381_v62 = vld [vmem:[%s1555_s3 + $0x40] sm:$0xff]  ;;  %v382_v63 = vld [vmem:[%s1555_s3 + $0x48] sm:$0xff]  ;;  %v383_v2 = vld [vmem:[%s1555_s3 + $0x50] sm:$0xff] }
  0x16   : > { %867 = vmatpush3.bf16.msra.mxu1 %v866_v21  ;;  %v875_v1 = vpack.c.bf16 %v382_v63, %v381_v62  ;;  %v384_v4 = vld [vmem:[%s1555_s3 + $0x58] sm:$0xff]  ;;  %v385_v9 = vld [vmem:[%s1555_s3 + $0x60] sm:$0xff]  ;;  %v386_v10 = vld [vmem:[%s1555_s3 + $0x68] sm:$0xff] }
  0x17   : > { %s731_s27 = sshll.u32 %s1100_s13, 8  ;;  %868 = vmatprep.subr.bf16.mxu1 %v998_v3  ;;  %v878_v7 = vpack.c.bf16 %v384_v4, %v383_v2  ;;  %v881_v14 = vpack.c.bf16 %v386_v10, %v385_v9  ;;  %v387_v4 = vld [vmem:[%s1555_s3 + $0x70] sm:$0xff]  ;;  %s203_s13 = sand.u32 1, %s988_s16  }
  0x18   : > { %s1126_s12 = scalar_lea.vmem %s1552_s0, %s731_s27  ;;  %846 = vmatpush3.bf16.msra.mxu0 %v845_v15  ;;  %s1334_s11 = scalar_lea.vmem %s1553_s1, %s731_s27 }
  0x19   : > { %v1130_v18 = vld [vmem:[%s1126_s12] sm:$0xff]  ;;  %v1133_v19 = vld [vmem:[%s1126_s12 + $0x8] sm:$0xff]  ;;  %v1136_v20 = vld [vmem:[%s1126_s12 + $0x10] sm:$0xff]  ;;  %847 = vmatprep.subr.bf16.mxu0 %v998_v3  ;;  %s1408_s27 = sshll.u32 %s203_s13, 8  ;;  %s1511_s29 = scalar_lea.sflag [#allocation3], %s203_s13 }
  0x1a   : > { %v248_v22 = vadd.f32 %v1133_v19, %v1130_v18  ;;  %v1148_v25 = vld [vmem:[%s1126_s12 + $0x18] sm:$0xff]  ;;  %v1159_v30 = vld [vmem:[%s1126_s12 + $0x20] sm:$0xff]  ;;  %v1170_v35 = vld [vmem:[%s1126_s12 + $0x28] sm:$0xff]  ;;  %870 = vmatpush3.bf16.msra.mxu1 %v869_v31  ;;  %s1446_s14 = scalar_lea.vmem [#allocation2], %s1408_s27 }
  0x1b   : > { %v1181_v40 = vld [vmem:[%s1126_s12 + $0x30] sm:$0xff]  ;;  %871 = vmatprep.subr.bf16.mxu1 %v998_v3  ;;  %v1186_v43 = vld [vmem:[%s1126_s12 + $0x38] sm:$0xff]  ;;  %v1197_v48 = vld [vmem:[%s1126_s12 + $0x40] sm:$0xff]  ;;  %s643_s22 = sshll.u32 %s1446_s14, 4  ;;  %s1491_s22 = int_to_ptr.vmem [resolvable:$true] %s643_s22 }
  0x1c   : > { %v249_v27 = vadd.f32 %v248_v22, %v1136_v20  ;;  %849 = vmatpush3.bf16.msra.mxu0 %v848_v26  ;;  %v1202_v50 = vld [vmem:[%s1126_s12 + $0x48] sm:$0xff]  ;;  %v1213_v55 = vld [vmem:[%s1126_s12 + $0x50] sm:$0xff]  ;;  %v1217_v57 = vld [vmem:[%s1126_s12 + $0x58] sm:$0xff]  ;;  %s934_s30 = scalar_lea.vmem %s1491_s22, 4096  ;;  %p941_p0 = scmp.lt.s32.totalorder %s1491_s22, %s939_s6 }
  0x1d   : > { %850 = vmatprep.subr.bf16.mxu0 %v998_v3  ;;  %v1222_v60 = vld [vmem:[%s1126_s12 + $0x60] sm:$0xff]  ;;  %v1232_v0 = vld [vmem:[%s1126_s12 + $0x68] sm:$0xff]  ;;  %v1242_v6 = vld [vmem:[%s1126_s12 + $0x70] sm:$0xff]  ;;  %p935_p11 = scmp.ne.s32.totalorder %s1491_s22, %s934_s30  ;;  %p942_p1 = scmp.lt.s32.totalorder %s940_s7, %s934_s30 }
  0x1e   : > { %v250_v32 = vadd.f32 %v249_v27, %v1148_v25  ;;  %873 = vmatpush3.bf16.msra.mxu1 %v872_v41  ;;  %v1253_v11 = vld [vmem:[%s1126_s12 + $0x78] sm:$0xff]  ;;  %v1257_v13 = vld [vmem:[%s1126_s12 + $0x80] sm:$0xff]  ;;  %v1262_v16 = vld [vmem:[%s1126_s12 + $0x88] sm:$0xff] }
  0x1f   : > { %874 = vmatprep.subr.bf16.mxu1 %v998_v3  ;;  %v1266_v21 = vld [vmem:[%s1126_s12 + $0x90] sm:$0xff]  ;;  %v1271_v23 = vld [vmem:[%s1126_s12 + $0x98] sm:$0xff]  ;;  %v1275_v26 = vld [vmem:[%s1126_s12 + $0xa0] sm:$0xff]  ;;  %p936_p12 = pnand %p935_p11, %p1067_p5  ;;  %p943_p2 = por %p942_p1, %p941_p0 }
  0x20   : > { %v251_v37 = vadd.f32 %v250_v32, %v1159_v30  ;;  %852 = vmatpush3.bf16.msra.mxu0 %v851_v36  ;;  %v1279_v28 = vld [vmem:[%s1126_s12 + $0xa8] sm:$0xff]  ;;  %v1283_v31 = vld [vmem:[%s1126_s12 + $0xb0] sm:$0xff]  ;;  %v1287_v32 = vld [vmem:[%s1126_s12 + $0xb8] sm:$0xff] }
  0x21   : > { %853 = vmatprep.subr.bf16.mxu0 %v998_v3  ;;  %v1291_v34 = vld [vmem:[%s1126_s12 + $0xc0] sm:$0xff]  ;;  %v1299_v39 = vld [vmem:[%s1126_s12 + $0xd0] sm:$0xff]  ;;  %v1311_v47 = vld [vmem:[%s1126_s12 + $0xe8] sm:$0xff]  ;;  %p937_p13 = pneg %p936_p12 }
  0x22   : > { %v252_v42 = vadd.f32 %v251_v37, %v1170_v35  ;;  %876 = vmatpush3.bf16.msra.mxu1 %v875_v1  ;;  %v1295_v37 = vld [vmem:[%s1126_s12 + $0xc8] sm:$0xff]  ;;  %v1319_v53 = vld [vmem:[%s1126_s12 + $0xf8] sm:$0xff] }
  0x23   : > { %877 = vmatprep.subr.bf16.mxu1 %v998_v3  ;;  %p944_p3 = pnand %p943_p2, %p937_p13 }
  0x24   : > { %v253_v45 = vadd.f32 %v252_v42, %v1181_v40  ;;  %855 = vmatpush3.bf16.msra.mxu0 %v854_v44  ;;  %v1303_v42 = vld [vmem:[%s1126_s12 + $0xd8] sm:$0xff] }
  0x25   : > { %856 = vmatprep.subr.bf16.mxu0 %v998_v3 }
  0x26   : > { %v254_v49 = vadd.f32 %v253_v45, %v1186_v43  ;;  %879 = vmatpush3.bf16.msra.mxu1 %v878_v7  ;;  %v1307_v45 = vld [vmem:[%s1126_s12 + $0xe0] sm:$0xff] }
  0x27   : > { %880 = vmatprep.subr.bf16.mxu1 %v998_v3 }
  0x28   : > { %v255_v52 = vadd.f32 %v254_v49, %v1197_v48  ;;  %858 = vmatpush3.bf16.msra.mxu0 %v857_v51  ;;  %v1315_v51 = vld [vmem:[%s1126_s12 + $0xf0] sm:$0xff] }
  0x29   : > { %859 = vmatprep.subr.bf16.mxu0 %v998_v3 }
  0x2a   : > { %v256_v56 = vadd.f32 %v255_v52, %v1202_v50  ;;  %882 = vmatpush3.bf16.msra.mxu1 %v881_v14 }
  0x2b   : > { %883 = vmatprep.subr.bf16.mxu1 %v998_v3 }
  0x2c   : > { %v257_v59 = vadd.f32 %v256_v56, %v1213_v55  ;;  %861 = vmatpush3.bf16.msra.mxu0 %v860_v58 }
  0x2e   : > { %v258_v61 = vadd.f32 %v257_v59, %v1217_v57 }
  0x30   : > { %v259_v5 = vadd.f32 %v258_v61, %v1222_v60 }
  0x32   : > { %v260_v8 = vadd.f32 %v259_v5, %v1232_v0  ;;  %v388_v5 = vld [vmem:[%s1555_s3 + $0x78] sm:$0xff] }
  0x33   : > { %v884_v7 = vpack.c.bf16 %v388_v5, %v387_v4 }
  0x34   : > { %v261_v12 = vadd.f32 %v260_v8, %v1242_v6 }
  0x35   : > { %885 = vmatpush3.bf16.msra.mxu1 %v884_v7 }
  0x36   : > { %v262_v15 = vadd.f32 %v261_v12, %v1253_v11 }
  0x38   : > { %v263_v17 = vadd.f32 %v262_v15, %v1257_v13 }
  0x3a   : > { %v264_v22 = vadd.f32 %v263_v17, %v1262_v16 }
  0x3c   : > { %v265_v24 = vadd.f32 %v264_v22, %v1266_v21 }
  0x3e   : > { %v266_v27 = vadd.f32 %v265_v24, %v1271_v23 }
  0x40   : > { %v267_v29 = vadd.f32 %v266_v27, %v1275_v26  ;;  %v465_v27 = vlaneseq }
  0x42   : > { %v268_v3 = vadd.f32 %v267_v29, %v1279_v28  ;;  %v466_v29 = vshrl.u32 %v465_v27, 7 }
  0x44   : > { %v269_v33 = vadd.f32 %v268_v3, %v1283_v31  ;;  %v467_v3 = vsub.s32 0, %v466_v29  ;;  %v523_v29 = vld [vmem:[%s1334_s11 + $0xb0] sm:$0xff] }
  0x46   : > { %v270_v36 = vadd.f32 %v269_v33, %v1287_v32 }
  0x48   : > { %v271_v38 = vadd.f32 %v270_v36, %v1291_v34 }
  0x4a   : > { %v272_v41 = vadd.f32 %v271_v38, %v1295_v37 }
  0x4c   : > { %v273_v44 = vadd.f32 %v272_v41, %v1299_v39 }
  0x4e   : > { %v274_v46 = vadd.f32 %v273_v44, %v1303_v42 }
  0x50   : > { %v275_v49 = vadd.f32 %v274_v46, %v1307_v45 }
  0x52   : > { %v276_v52 = vadd.f32 %v275_v49, %v1311_v47 }
  0x54   : > { %v277_v54 = vadd.f32 %v276_v52, %v1315_v51 }
  0x56   : > { %v278_v56 = vadd.f32 %v277_v54, %v1319_v53 }
  0x58   : > { %v279_v58 = vrot.slane %v278_v56, 4 }
  0x5a   : > { %v280_v59 = vadd.f32 %v279_v58, %v278_v56  ;;  %v501_v58 = vld [vmem:[%s1334_s11] sm:$0xff] }
  0x5c   : > { %v281_v61 = vrot.slane %v280_v59, 2 }
  0x5e   : > { %v282_v62 = vadd.f32 %v281_v61, %v280_v59  ;;  %v504_v59 = vld [vmem:[%s1334_s11 + $0x18] sm:$0xff] }
  0x60   : > { %v283_v63 = vrot.slane %v282_v62, 1 }
  0x62   : > { %v284_v1 = vadd.f32 %v283_v63, %v282_v62  ;;  %v508_v62 = vld [vmem:[%s1334_s11 + $0x38] sm:$0xff] }
  0x64   : > { %v285_v2 = vmul.f32 0.00390625, %v284_v1 }
  0x66   : > { %801 = vmatmul.mubr.f32.vlgmr.msra.gmra.mrb[0].mxu0 %v285_v2 }
 0x139   : > { %v368_v8 = vpop.f32.mrb[0].mxu0 }
 0x13a   : > { %v372_v9 = vmax.f32 %v368_v8, 0.0  ;;  %v802_v10 = vpop.f32.mrb[1].mxu0  ;;  %v514_v8 = vld [vmem:[%s1334_s11 + $0x68] sm:$0xff] }
 0x13c   : > { %836 = vmatmul.mubr.f32.vlgmr.msra.gmra.mrb[0].mxu1 %v372_v9 }
 0x20f   : > { %v455_v12 = vpop.f32.mrb[0].mxu1 }
 0x210   : > { %v459_v14 = vsub.f32 0.0, %v455_v12  ;;  %v837_v15 = vpop.f32.mrb[1].mxu1 }
 0x212   : > { %v460_v17 = vmul.f32 1.442695, %v459_v14 }
 0x214   : > { %930 = vpow2.f32 %v460_v17 }
 0x21e   : > { %v931_v22 = vpop.eup %930 }
 0x21f   : > { %v462_v24 = vadd.f32 1.0, %v931_v22 }
 0x221   : > { %932 = vrcp.f32 %v462_v24 }
 0x22b   : > { %v933_v33 = vpop.eup %932 }
 0x22c   : > { %v468_v36 = vrot.slane %v933_v33, %v467_v3 }
 0x22e   : > { %v469_v38 = vmul.f32 %v468_v36, %v1130_v18  ;;  %v470_v41 = vmul.f32 %v468_v36, %v1133_v19  ;;  %v471_v44 = vmul.f32 %v468_v36, %v1136_v20  ;;  %v472_v46 = vmul.f32 %v468_v36, %v1148_v25 }
 0x22f   : > { %v473_v49 = vmul.f32 %v468_v36, %v1159_v30  ;;  %v474_v52 = vmul.f32 %v468_v36, %v1170_v35  ;;  %v475_v54 = vmul.f32 %v468_v36, %v1181_v40  ;;  %v476_v56 = vmul.f32 %v468_v36, %v1186_v43  ;;  %v502_v30 = vld [vmem:[%s1334_s11 + $0x8] sm:$0xff]  ;;  %v503_v35 = vld [vmem:[%s1334_s11 + $0x10] sm:$0xff] }
 0x230   : > { %v477_v18 = vmul.f32 %v468_v36, %v1197_v48  ;;  %v478_v19 = vmul.f32 %v468_v36, %v1202_v50  ;;  %v479_v20 = vmul.f32 %v468_v36, %v1213_v55  ;;  %v480_v25 = vmul.f32 %v468_v36, %v1217_v57  ;;  %v505_v50 = vld [vmem:[%s1334_s11 + $0x20] sm:$0xff]  ;;  %v506_v55 = vld [vmem:[%s1334_s11 + $0x28] sm:$0xff]  ;;  %v507_v57 = vld [vmem:[%s1334_s11 + $0x30] sm:$0xff] }
 0x231   : > { %v481_v40 = vmul.f32 %v468_v36, %v1222_v60  ;;  %v482_v43 = vmul.f32 %v468_v36, %v1232_v0  ;;  %v483_v61 = vmul.f32 %v468_v36, %v1242_v6  ;;  %v484_v48 = vmul.f32 %v468_v36, %v1253_v11  ;;  %v509_v0 = vld [vmem:[%s1334_s11 + $0x40] sm:$0xff]  ;;  %v510_v6 = vld [vmem:[%s1334_s11 + $0x48] sm:$0xff]  ;;  %v511_v11 = vld [vmem:[%s1334_s11 + $0x50] sm:$0xff] }
 0x232   : > { %v485_v63 = vmul.f32 %v468_v36, %v1257_v13  ;;  %v486_v1 = vmul.f32 %v468_v36, %v1262_v16  ;;  %v487_v2 = vmul.f32 %v468_v36, %v1266_v21  ;;  %v488_v60 = vmul.f32 %v468_v36, %v1271_v23  ;;  %v512_v16 = vld [vmem:[%s1334_s11 + $0x58] sm:$0xff]  ;;  %v513_v21 = vld [vmem:[%s1334_s11 + $0x60] sm:$0xff] }
 0x233   : > { %v489_v4 = vmul.f32 %v468_v36, %v1275_v26  ;;  %v490_v5 = vmul.f32 %v468_v36, %v1279_v28  ;;  %v491_v7 = vmul.f32 %v468_v36, %v1283_v31  ;;  %v492_v13 = vmul.f32 %v468_v36, %v1287_v32  ;;  %v515_v28 = vld [vmem:[%s1334_s11 + $0x70] sm:$0xff]  ;;  %v516_v31 = vld [vmem:[%s1334_s11 + $0x78] sm:$0xff]  ;;  %v517_v32 = vld [vmem:[%s1334_s11 + $0x80] sm:$0xff] }
 0x234   : > { %v493_v23 = vmul.f32 %v468_v36, %v1291_v34  ;;  %v494_v9 = vmul.f32 %v468_v36, %v1295_v37  ;;  %v495_v10 = vmul.f32 %v468_v36, %v1299_v39  ;;  %v496_v26 = vmul.f32 %v468_v36, %v1303_v42  ;;  %v518_v37 = vld [vmem:[%s1334_s11 + $0x88] sm:$0xff]  ;;  %v519_v39 = vld [vmem:[%s1334_s11 + $0x90] sm:$0xff]  ;;  %v520_v42 = vld [vmem:[%s1334_s11 + $0x98] sm:$0xff] }
 0x235   : > { %v497_v12 = vmul.f32 %v468_v36, %v1307_v45  ;;  %v498_v14 = vmul.f32 %v468_v36, %v1311_v47  ;;  %v499_v15 = vmul.f32 %v468_v36, %v1315_v51  ;;  %v500_v34 = vmul.f32 %v468_v36, %v1319_v53  ;;  %v521_v45 = vld [vmem:[%s1334_s11 + $0xa0] sm:$0xff]  ;;  %v522_v47 = vld [vmem:[%s1334_s11 + $0xa8] sm:$0xff]  ;;  %v524_v36 = vld [vmem:[%s1334_s11 + $0xb8] sm:$0xff] }
 0x236   : > { %v533_v17 = vadd.f32 %v501_v58, %v469_v38  ;;  %v534_v22 = vadd.f32 %v502_v30, %v470_v41  ;;  %v535_v24 = vadd.f32 %v503_v35, %v471_v44  ;;  %v536_v27 = vadd.f32 %v504_v59, %v472_v46  ;;  %v525_v38 = vld [vmem:[%s1334_s11 + $0xc0] sm:$0xff]  ;;  %v526_v41 = vld [vmem:[%s1334_s11 + $0xc8] sm:$0xff]  ;;  %v527_v35 = vld [vmem:[%s1334_s11 + $0xd0] sm:$0xff] }
 0x237   : > { %v537_v51 = vadd.f32 %v505_v50, %v473_v49  ;;  %v538_v3 = vadd.f32 %v506_v55, %v474_v52  ;;  %v539_v53 = vadd.f32 %v507_v57, %v475_v54  ;;  %v540_v33 = vadd.f32 %v508_v62, %v476_v56  ;;  %v528_v59 = vld [vmem:[%s1334_s11 + $0xd8] sm:$0xff]  ;;  %v529_v49 = vld [vmem:[%s1334_s11 + $0xe0] sm:$0xff]  ;;  %v530_v55 = vld [vmem:[%s1334_s11 + $0xe8] sm:$0xff] }
 0x238   : > { %v541_v44 = vadd.f32 %v509_v0, %v477_v18  ;;  %v542_v46 = vadd.f32 %v510_v6, %v478_v19  ;;  %v543_v58 = vadd.f32 %v511_v11, %v479_v20  ;;  %v544_v30 = vadd.f32 %v512_v16, %v480_v25  ;;  %v531_v57 = vld [vmem:[%s1334_s11 + $0xf0] sm:$0xff]  ;;  %v532_v18 = vld [vmem:[%s1334_s11 + $0xf8] sm:$0xff] }
 0x239   : > { %v1398_v50 = vadd.f32 %v513_v21, %v481_v40  ;;  %v1400_v52 = vadd.f32 %v514_v8, %v482_v43  ;;  %v1402_v54 = vadd.f32 %v515_v28, %v483_v61  ;;  %v1404_v56 = vadd.f32 %v516_v31, %v484_v48 }
 0x23a   : > { %v1413_v19 = vadd.f32 %v517_v32, %v485_v63  ;;  %v1415_v20 = vadd.f32 %v518_v37, %v486_v1  ;;  %v1417_v25 = vadd.f32 %v519_v39, %v487_v2  ;;  %v1419_v40 = vadd.f32 %v520_v42, %v488_v60 }
 0x23b   : > { %v1421_v43 = vadd.f32 %v521_v45, %v489_v4  ;;  %v1423_v61 = vadd.f32 %v522_v47, %v490_v5  ;;  %v1425_v48 = vadd.f32 %v523_v29, %v491_v7  ;;  %v1427_v62 = vadd.f32 %v524_v36, %v492_v13 }
 0x23c   : > { %v1429_v0 = vadd.f32 %v525_v38, %v493_v23  ;;  %v1431_v6 = vadd.f32 %v526_v41, %v494_v9  ;;  %v1433_v63 = vadd.f32 %v527_v35, %v495_v10  ;;  %v1435_v1 = vadd.f32 %v528_v59, %v496_v26 }
 0x23d   : > { %v1437_v2 = vadd.f32 %v529_v49, %v497_v12  ;;  %v1439_v60 = vadd.f32 %v530_v55, %v498_v14  ;;  %v1441_v11 = vadd.f32 %v531_v57, %v499_v15  ;;  %v1443_v4 = vadd.f32 %v532_v18, %v500_v34 }
 0x23e   : > { %v565_v5 = vmax.f32 %v533_v17, 0.0  ;;  %v566_v7 = vmax.f32 %v534_v22, 0.0  ;;  %v567_v13 = vmax.f32 %v535_v24, 0.0  ;;  %v568_v16 = vmax.f32 %v536_v27, 0.0 }
 0x23f   : > { %v569_v21 = vmax.f32 %v537_v51, 0.0  ;;  %v570_v8 = vmax.f32 %v538_v3, 0.0  ;;  %v571_v23 = vmax.f32 %v539_v53, 0.0  ;;  %v572_v9 = vmax.f32 %v540_v33, 0.0 }
 0x240   : > { %v573_v10 = vmax.f32 %v541_v44, 0.0  ;;  %v574_v26 = vmax.f32 %v542_v46, 0.0  ;;  %v575_v28 = vmax.f32 %v543_v58, 0.0  ;;  %v576_v31 = vmax.f32 %v544_v30, 0.0  ;;  %597 = vst [vmem:[%s1446_s14] sm:$0xff] %v565_v5  ;;  %598 = vst [vmem:[%s1446_s14 + $0x8] sm:$0xff] %v566_v7 }
 0x241   : > { %599 = vst [vmem:[%s1446_s14 + $0x10] sm:$0xff] %v567_v13  ;;  %600 = vst [vmem:[%s1446_s14 + $0x18] sm:$0xff] %v568_v16  ;;  %v577_v32 = vmax.f32 %v1398_v50, 0.0  ;;  %v578_v12 = vmax.f32 %v1400_v52, 0.0  ;;  %v579_v14 = vmax.f32 %v1402_v54, 0.0  ;;  %v580_v15 = vmax.f32 %v1404_v56, 0.0 }
 0x242   : > { %601 = vst [vmem:[%s1446_s14 + $0x20] sm:$0xff] %v569_v21  ;;  %602 = vst [vmem:[%s1446_s14 + $0x28] sm:$0xff] %v570_v8  ;;  %v581_v34 = vmax.f32 %v1413_v19, 0.0  ;;  %v582_v37 = vmax.f32 %v1415_v20, 0.0  ;;  %v583_v39 = vmax.f32 %v1417_v25, 0.0  ;;  %v584_v42 = vmax.f32 %v1419_v40, 0.0 }
 0x243   : > { %603 = vst [vmem:[%s1446_s14 + $0x30] sm:$0xff] %v571_v23  ;;  %604 = vst [vmem:[%s1446_s14 + $0x38] sm:$0xff] %v572_v9  ;;  %v585_v17 = vmax.f32 %v1421_v43, 0.0  ;;  %v586_v22 = vmax.f32 %v1423_v61, 0.0  ;;  %v587_v24 = vmax.f32 %v1425_v48, 0.0  ;;  %v588_v27 = vmax.f32 %v1427_v62, 0.0 }
 0x244   : > { %605 = vst [vmem:[%s1446_s14 + $0x40] sm:$0xff] %v573_v10  ;;  %606 = vst [vmem:[%s1446_s14 + $0x48] sm:$0xff] %v574_v26  ;;  %v589_v45 = vmax.f32 %v1429_v0, 0.0  ;;  %v590_v47 = vmax.f32 %v1431_v6, 0.0  ;;  %v591_v29 = vmax.f32 %v1433_v63, 0.0  ;;  %v592_v51 = vmax.f32 %v1435_v1, 0.0 }
 0x245   : > { %607 = vst [vmem:[%s1446_s14 + $0x50] sm:$0xff] %v575_v28  ;;  %608 = vst [vmem:[%s1446_s14 + $0x58] sm:$0xff] %v576_v31  ;;  %v593_v3 = vmax.f32 %v1437_v2, 0.0  ;;  %v594_v53 = vmax.f32 %v1439_v60, 0.0  ;;  %v595_v33 = vmax.f32 %v1441_v11, 0.0  ;;  %v596_v36 = vmax.f32 %v1443_v4, 0.0 }
 0x246   : > { %609 = vst [vmem:[%s1446_s14 + $0x60] sm:$0xff] %v577_v32  ;;  %610 = vst [vmem:[%s1446_s14 + $0x68] sm:$0xff] %v578_v12 }
 0x247   : > { %611 = vst [vmem:[%s1446_s14 + $0x70] sm:$0xff] %v579_v14  ;;  %612 = vst [vmem:[%s1446_s14 + $0x78] sm:$0xff] %v580_v15 }
 0x248   : > { %613 = vst [vmem:[%s1446_s14 + $0x80] sm:$0xff] %v581_v34  ;;  %614 = vst [vmem:[%s1446_s14 + $0x88] sm:$0xff] %v582_v37 }
 0x249   : > { %615 = vst [vmem:[%s1446_s14 + $0x90] sm:$0xff] %v583_v39  ;;  %616 = vst [vmem:[%s1446_s14 + $0x98] sm:$0xff] %v584_v42 }
 0x24a   : > { %617 = vst [vmem:[%s1446_s14 + $0xa0] sm:$0xff] %v585_v17  ;;  %618 = vst [vmem:[%s1446_s14 + $0xa8] sm:$0xff] %v586_v22 }
 0x24b   : > { %619 = vst [vmem:[%s1446_s14 + $0xb0] sm:$0xff] %v587_v24  ;;  %620 = vst [vmem:[%s1446_s14 + $0xb8] sm:$0xff] %v588_v27 }
 0x24c   : > { %621 = vst [vmem:[%s1446_s14 + $0xc0] sm:$0xff] %v589_v45  ;;  %622 = vst [vmem:[%s1446_s14 + $0xc8] sm:$0xff] %v590_v47 }
 0x24d   : > { %623 = vst [vmem:[%s1446_s14 + $0xd0] sm:$0xff] %v591_v29  ;;  %624 = vst [vmem:[%s1446_s14 + $0xd8] sm:$0xff] %v592_v51 }
 0x24e   : > { %625 = vst [vmem:[%s1446_s14 + $0xe0] sm:$0xff] %v593_v3  ;;  %626 = vst [vmem:[%s1446_s14 + $0xe8] sm:$0xff] %v594_v53 }
 0x24f   : > { %627 = vst [vmem:[%s1446_s14 + $0xf0] sm:$0xff] %v595_v33  ;;  %628 = vst [vmem:[%s1446_s14 + $0xf8] sm:$0xff] %v596_v36 }
 0x250   : > { %947 = shalt.err (!%p944_p3)
}
 0x251   : > { %s948_s8 = scalar_lea.hbm %s1489_s28, 4096  ;;  %s952_s10 = scalar_lea.hbm %s1556_s4, 8192 }
 0x252   : > { %p949_p4 = scmp.ne.s32.totalorder %s1489_s28, %s948_s8  ;;  %p953_p9 = scmp.lt.u32.totalorder %s1489_s28, %s1556_s4 }
 0x253   : > { %p954_p10 = scmp.lt.u32.totalorder %s952_s10, %s948_s8  ;;  %p956_p12 = scmp.lt.u32.totalorder %s948_s8, %s1489_s28 }
 0x254   : > { %p950_p7 = pnand %p949_p4, %p1067_p5 }
 0x255   : > { %p955_p11 = por %p954_p10, %p953_p9 }
 0x256   : > { %p951_p8 = pneg %p950_p7 }
 0x257   : > { %p957_p13 = por %p956_p12, %p955_p11 }
 0x259   : > { %p958_p0 = pnand %p957_p13, %p951_p8 }
 0x25b   : > { %961 = shalt.err (!%p958_p0)
}
 0x25c   : > { %s1002_s27 = smov 128   ;;  %s1003_s14 = smov 8  }
 0x25d   : > { %886 = dma.vmem_to_hbm [thread:$0]  (%p1067_p5), %s1491_s22, 4096, %s1489_s28, %s1511_s29, %s1002_s27, %s1002_s27, %s1003_s14  }
 0x25e PF: > { %p892_p1 = scmp.ge.s32.totalorder %s996_s18, 2  ;;  %s658_s20 = sand.u32 1, %s984_s15  }
 0x25f   : > { %s659_s19 = scalar_lea.sflag [#allocation3], %s658_s20 }
 0x260   : > { %p889_p2 = pnand %p892_p1, %p1071_p6 }
 0x262   : > { %979 = dma.done.wait (!%p889_p2), %s659_s19, 4096  }
 0x263   : > { %981 = vsyncadd (!%p889_p2), %s659_s19, 4294963200  ;;  %p14_p3 = scmp.ge.s32.totalorder %s1054_s21, 4   ;;  %s1559_s15 = smov %s988_s16 }
 0x264   : > { %s1560_s16 = smov %s992_s17  ;;  %s1561_s17 = smov %s1065_s24 }
 0x265   : > { %s1562_s18 = smov %s1054_s21  ;;  %16 = sbr.rel (!%p14_p3) target bundleno = 3 (0x3), region = 74 }
 0x26c   :  { %664 = vsyncpa [#allocation3], 1 }
 0x26d   :  { %666 = vsyncpa [#allocation3 + $0x1], 1 }

</bundles_post_ra>
